<compile_context>
chip_gen: v5e
topology: v5e:2x2
jax: 0.10.0
libtpu: 0.0.40
codegen_flags: <defaults>
</compile_context>

<pallas_src>
import functools

import jax
import jax.numpy as jnp
from jax import lax
from jax.experimental import pallas as pl
from jax.experimental.pallas import tpu as pltpu


def _round_up(x: int, m: int) -> int:
    return ((x + m - 1) // m) * m


def _vmem_capacity_bytes() -> int:
    """Physical VMEM of the attached TPU; conservative (v7x, 64 MiB) fallback."""
    try:
        return int(pltpu.get_tpu_info().vmem_capacity_bytes)
    except Exception:
        return 64 * 1024 * 1024


def _derive_tiling(seq_len, b_block, hidden, gx_itemsize, whh_itemsize,
                   time_chunk, whh_buffers):
    """Generation-aware time-chunk + scoped-VMEM-limit choice.

    VMEM model (bytes):
      gx   blocks : 2 * tc * BB * 4H * sz(gx)   (double-buffered input)
      out  blocks : 2 * BB * tc * H  * 4        (double-buffered output)
      W_hh        : nbuf * H * 4H * sz(whh)     (resident weights)
      h/c carry   : 2 * BB * H * 4
    """
    cap = _vmem_capacity_bytes()
    # ~96 MiB scoped limit on 128-MiB parts (v5e/v6e), ~48 MiB on 64-MiB v7x.
    vmem_limit = min(int(cap * 0.75), 110 * 1024 * 1024)
    if time_chunk is not None:
        return int(time_chunk), vmem_limit
    data_budget = int(cap * 0.5)
    fixed = (whh_buffers * hidden * 4 * hidden * whh_itemsize
             + 2 * b_block * hidden * 4)
    per_step = (2 * b_block * 4 * hidden * gx_itemsize
                + 2 * b_block * hidden * 4)
    tc = max(8, (data_budget - fixed) // per_step)
    tc = min(tc, _round_up(seq_len, 8))
    tc = max(8, (tc // 8) * 8)          # sublane-aligned chunk
    return int(tc), vmem_limit


def _lstm_chunk_kernel(gx_ref, whh_ref, out_ref, h_ref, c_ref):
    """One (batch_block, time_chunk) tile of the LSTM recurrence.

    gx_ref : (tc, BB, 4H) storage dtype — precomputed x_t @ W_ih^T + b,
             time-major, gate order (i, f, o, g)
    whh_ref: (H, 4H)      resident recurrent weights, gate order (i, f, o, g)
    out_ref: (BB, tc, H)  f32 — batch-first hidden states for this tile
    h_ref, c_ref: (BB, H) f32 — carry, persists across time chunks (grid axis 1)

    Grid = (batch_blocks, time_chunks). Axis 0 is "parallel" (independent batch
    rows -> v7x megacore shardable); axis 1 is the sequential recurrence and
    must stay "arbitrary".
    """

    @pl.when(pl.program_id(1) == 0)          # new batch block -> reset carry
    def _():
        h_ref[...] = jnp.zeros_like(h_ref)
        c_ref[...] = jnp.zeros_like(c_ref)

    tc = gx_ref.shape[0]                     # static chunk length
    hidden = h_ref.shape[1]                  # static hidden size
    mxu_dtype = whh_ref.dtype                # bf16 fast path on v5e/v6e/v7x
    whh = whh_ref[...]                       # load once, reused every step

    # TODO(synk): at production H, drive the MXU explicitly
    # (pltpu.matmul_push_rhs(whh) once per chunk + matmul_acc_lhs/pop per step)
    # to take the repeated weight push off the serial critical path.
    def step(t, carry):
        h, c = carry
        gates = gx_ref[t].astype(jnp.float32) + jnp.dot(
            h.astype(mxu_dtype), whh, preferred_element_type=jnp.float32)
        # Gate order (i, f, o, g): one sigmoid pass + one tanh pass on the EUP.
        ifo = jax.nn.sigmoid(gates[:, :3 * hidden])
        g_g = jnp.tanh(gates[:, 3 * hidden:])
        i_g = ifo[:, :hidden]
        f_g = ifo[:, hidden:2 * hidden]
        o_g = ifo[:, 2 * hidden:]
        c_new = f_g * c + i_g * g_g
        h_new = o_g * jnp.tanh(c_new)
        # Batch-first per-step store (cheap sublane-strided VMEM write); the
        # HBM writeback is one dense (BB, tc, H) block per tile, so no
        # post-kernel transpose is needed.
        out_ref[:, t, :] = h_new.astype(out_ref.dtype)
        return h_new, c_new

    # Partial unroll: LLO visibility without vreg-pressure blowup at large tc.
    h_fin, c_fin = lax.fori_loop(0, tc, step, (h_ref[...], c_ref[...]),
                                 unroll=min(tc, 8))
    h_ref[...] = h_fin
    c_ref[...] = c_fin


@functools.partial(
    jax.jit,
    static_argnames=("matmul_dtype", "gx_dtype", "time_chunk", "batch_block",
                     "precision", "whh_buffer_count"))
def seq2seq_encoder_forward(sequences_batch, sequences_lengths, params, *,
                            matmul_dtype=jnp.float32, gx_dtype=None,
                            time_chunk=None, batch_block=None,
                            precision=None, whh_buffer_count=None):
    """Pallas LSTM encoder forward (Seq2SeqEncoder with nn.LSTM, 1 layer).

    sequences_batch : (B, T, I) float32, batch_first (like PyTorch)
    sequences_lengths: (B,) int32 — unused by the forward (parity with PyTorch)
    params: dict with w_ih (4H, I), w_hh (4H, H), b_ih (4H,), b_hh (4H,)
            in torch.nn.LSTM layout / gate order (i, f, g, o).
    matmul_dtype : MXU-input + gates_x storage dtype. bf16 is recommended on
        ALL generations (v5e's MXU is bf16-native too); elementwise gate math
        stays f32. Note: in the bf16 path h is re-cast per step, so rounding
        compounds with T — validate tolerance at production sequence lengths.
    precision    : matmul precision for the hoisted input projection
        (None = fast default; lax.Precision.HIGHEST for exact f32 parity).
    batch_block  : rows per grid step along the "parallel" batch axis
        (set to B_pad // 2 on v7x to use both TensorCores).
    whh_buffer_count : set to 1 at production H (esp. v7x, 64 MiB VMEM) to
        single-buffer the resident W_hh block via pl.Buffered.
    Returns: outputs (B, T, H) float32, batch_first.
    """
    del sequences_lengths  # PyTorch forward ignores it (h0=None, no packing).

    x = sequences_batch.astype(jnp.float32)
    B, T, I = x.shape
    H = params["w_ih"].shape[0] // 4
    if gx_dtype is None:
        gx_dtype = matmul_dtype

    # --- weight prep (outside the recurrence) -------------------------------
    # Reorder torch's (i, f, g, o) gate blocks to (i, f, o, g) so the kernel
    # does one sigmoid over [:3H] and one tanh over [3H:].
    perm = jnp.concatenate([jnp.arange(0, 2 * H),
                            jnp.arange(3 * H, 4 * H),
                            jnp.arange(2 * H, 3 * H)])
    w_ih = jnp.asarray(params["w_ih"], jnp.float32)[perm]       # (4H, I)
    w_hh = jnp.asarray(params["w_hh"], jnp.float32)[perm]       # (4H, H)
    bias = (jnp.asarray(params["b_ih"], jnp.float32)
            + jnp.asarray(params["b_hh"], jnp.float32))[perm]   # (4H,)
    w_hh_t = w_hh.T.astype(matmul_dtype)                        # (H, 4H)

    # --- padding / tiling ----------------------------------------------------
    b_pad = max(8, _round_up(B, 8))                 # sublane-aligned batch
    bb = b_pad if batch_block is None else batch_block
    assert b_pad % bb == 0 and (bb % 8 == 0 or bb == b_pad), \
        "batch_block must divide padded batch and be sublane-aligned"

    whh_buffers = 2 if whh_buffer_count is None else whh_buffer_count
    tc, vmem_limit = _derive_tiling(
        T, bb, H, jnp.dtype(gx_dtype).itemsize,
        jnp.dtype(matmul_dtype).itemsize, time_chunk, whh_buffers)
    t_pad = _round_up(T, tc)                        # pad time instead of tc=1
    assert t_pad % tc == 0 and (tc % 8 == 0 or tc == t_pad)

    x = jnp.pad(x, ((0, b_pad - B), (0, t_pad - T), (0, 0)))
    x_tm = jnp.transpose(x, (1, 0, 2))              # transpose the I-wide tensor

    # --- hoisted input projection: one big MXU matmul over all T*B rows -----
    gates_x = jnp.einsum(
        "tbi,ig->tbg",
        x_tm.astype(matmul_dtype), w_ih.T.astype(matmul_dtype),
        preferred_element_type=jnp.float32, precision=precision,
    ) + bias[None, None, :]
    gates_x = gates_x.astype(gx_dtype)              # (t_pad, b_pad, 4H)

    whh_spec_kwargs = {}
    if whh_buffer_count is not None:
        whh_spec_kwargs["pipeline_mode"] = pl.Buffered(whh_buffer_count)

    out = pl.pallas_call(
        _lstm_chunk_kernel,
        out_shape=jax.ShapeDtypeStruct((b_pad, t_pad, H), jnp.float32),
        grid_spec=pltpu.PrefetchScalarGridSpec(
            num_scalar_prefetch=0,
            grid=(b_pad // bb, t_pad // tc),
            in_specs=[
                # Precomputed x-gates for this (time, batch) tile.
                pl.BlockSpec((tc, bb, 4 * H), lambda b, c: (c, b, 0)),
                # Recurrent weights: constant index_map -> resident in VMEM.
                pl.BlockSpec((H, 4 * H), lambda b, c: (0, 0),
                             **whh_spec_kwargs),
            ],
            # Batch-first dense output tile -> no post-kernel transpose.
            out_specs=pl.BlockSpec((bb, tc, H), lambda b, c: (b, c, 0)),
            scratch_shapes=[
                pltpu.VMEM((bb, H), jnp.float32),   # h carry
                pltpu.VMEM((bb, H), jnp.float32),   # c carry
            ],
        ),
        compiler_params=pltpu.CompilerParams(
            dimension_semantics=("parallel", "arbitrary"),
            vmem_limit_bytes=int(vmem_limit),
        ),
    )(gates_x, w_hh_t)

    return out[:B, :T, :]                           # strip batch/time padding


def _reference_lstm(sequences_batch, params):
    """Pure-JAX reference (lax.scan) mirroring torch.nn.LSTM semantics."""
    w_ih = params["w_ih"].astype(jnp.float32)
    w_hh = params["w_hh"].astype(jnp.float32)
    b = (params["b_ih"] + params["b_hh"]).astype(jnp.float32)
    H = w_hh.shape[1]
    x_tm = jnp.transpose(sequences_batch.astype(jnp.float32), (1, 0, 2))

    def step(carry, x_t):
        h, c = carry
        gates = (jnp.dot(x_t, w_ih.T, precision=lax.Precision.HIGHEST)
                 + jnp.dot(h, w_hh.T, precision=lax.Precision.HIGHEST) + b)
        i = jax.nn.sigmoid(gates[:, 0 * H:1 * H])
        f = jax.nn.sigmoid(gates[:, 1 * H:2 * H])
        g = jnp.tanh(gates[:, 2 * H:3 * H])
        o = jax.nn.sigmoid(gates[:, 3 * H:4 * H])
        c_new = f * c + i * g
        h_new = o * jnp.tanh(c_new)
        return (h_new, c_new), h_new

    B = sequences_batch.shape[0]
    init = (jnp.zeros((B, H), jnp.float32), jnp.zeros((B, H), jnp.float32))
    _, ys = jax.lax.scan(step, init, x_tm)
    return jnp.transpose(ys, (1, 0, 2))


if __name__ == "__main__":
    # Module config: rnn_type=nn.LSTM, input_size=16, hidden_size=32,
    # num_layers=1, bias=True, bidirectional=False (dropout inactive, 1 layer).
    B, T, I, H = 2, 8, 16, 32

    key = jax.random.PRNGKey(0)
    k_x, k1, k2, k3, k4, k_x2 = jax.random.split(key, 6)

    # torch.nn.LSTM-shaped params, uniform(-1/sqrt(H), 1/sqrt(H)) init.
    bound = 1.0 / jnp.sqrt(jnp.float32(H))
    params = {
        "w_ih": jax.random.uniform(k1, (4 * H, I), jnp.float32, -bound, bound),
        "w_hh": jax.random.uniform(k2, (4 * H, H), jnp.float32, -bound, bound),
        "b_ih": jax.random.uniform(k3, (4 * H,), jnp.float32, -bound, bound),
        "b_hh": jax.random.uniform(k4, (4 * H,), jnp.float32, -bound, bound),
    }

    sequences_batch = jax.random.normal(k_x, (B, T, I), jnp.float32)
    sequences_lengths = jnp.full((B,), T, jnp.int32)
    ref = _reference_lstm(sequences_batch, params)

    # 1) Default fast path (f32 storage, default MXU precision on the hoisted
    #    input projection).
    out = jax.block_until_ready(
        seq2seq_encoder_forward(sequences_batch, sequences_lengths, params))
    assert out.shape == (B, T, H)
    assert jnp.allclose(out, ref, atol=5e-2, rtol=5e-2), "default path mismatch"

    # 2) Exact-parity path (HIGHEST precision on the input projection) matches
    #    the f32 reference tightly.
    out_par = jax.block_until_ready(seq2seq_encoder_forward(
        sequences_batch, sequences_lengths, params,
        precision=lax.Precision.HIGHEST))
    assert jnp.allclose(out_par, ref, atol=1e-4, rtol=1e-4), "parity mismatch"

    # 3) bf16 MXU-input / bf16 gates_x storage path (recommended on v5e/v6e/v7x).
    out_bf16 = jax.block_until_ready(seq2seq_encoder_forward(
        sequences_batch, sequences_lengths, params, matmul_dtype=jnp.bfloat16))
    assert jnp.allclose(out_bf16, ref, atol=5e-2, rtol=5e-2), "bf16 mismatch"

    # 4) Multi-tile path: 2 batch blocks x 2 time chunks — exercises the h/c
    #    carry across chunks and the "parallel" batch axis used by v7x megacore.
    B2, T2 = 16, 16
    x2 = jax.random.normal(k_x2, (B2, T2, I), jnp.float32)
    len2 = jnp.full((B2,), T2, jnp.int32)
    ref2 = _reference_lstm(x2, params)
    out2 = jax.block_until_ready(seq2seq_encoder_forward(
        x2, len2, params, precision=lax.Precision.HIGHEST,
        batch_block=8, time_chunk=8))
    assert out2.shape == (B2, T2, H)
    assert jnp.allclose(out2, ref2, atol=1e-4, rtol=1e-4), "multi-tile mismatch"

    print("KERNEL_OK")
</pallas_src>

<mosaic_0001>
module attributes {stable_mosaic.version = 11 : i64} {
  func.func @_lstm_chunk_kernel(%arg0: i32, %arg1: i32, %arg2: memref<8x8x128xf32, #tpu.memory_space<vmem>>, %arg3: memref<32x128xf32, #tpu.memory_space<vmem>>, %arg4: memref<8x8x32xf32, #tpu.memory_space<vmem>>, %arg5: memref<8x32xf32, #tpu.memory_space<vmem>>, %arg6: memref<8x32xf32, #tpu.memory_space<vmem>>) attributes {dimension_semantics = [#tpu.dimension_semantics<parallel>, #tpu.dimension_semantics<arbitrary>], iteration_bounds = array<i64: 1, 1>, scalar_prefetch = 0 : i64, scratch_operands = 2 : i64, tpu.core_type = #tpu.core_type<tc>, window_params = [{transform_indices = @transform_0, window_bounds = array<i64: 8, 8, 128>}, {pipeline_mode = #tpu.pipeline_mode<synchronous>, transform_indices = @transform_1, window_bounds = array<i64: 32, 128>}, {transform_indices = @transform_2, window_bounds = array<i64: 8, 8, 32>}]} {
    %c0_i32 = arith.constant 0 : i32
    %0 = arith.cmpi eq, %arg1, %c0_i32 : i32
    %1 = arith.extui %0 : i1 to i32
    %c0_i32_0 = arith.constant 0 : i32
    %2 = arith.cmpi ne, %1, %c0_i32_0 : i32
    scf.if %2 {
      %cst_58 = arith.constant 0.000000e+00 : f32
      %208 = vector.broadcast %cst_58 : f32 to vector<8x32xf32>
      %c0_59 = arith.constant 0 : index
      %c0_60 = arith.constant 0 : index
      %209 = vector.load %arg5[%c0_59, %c0_60] : memref<8x32xf32, #tpu.memory_space<vmem>>, vector<8x32xf32>
      tpu.vector_store %arg5[%c0_59, %c0_60], %208 {strides = array<i32>} : memref<8x32xf32, #tpu.memory_space<vmem>>, vector<8x32xf32>,
      %cst_61 = arith.constant 0.000000e+00 : f32
      %210 = vector.broadcast %cst_61 : f32 to vector<8x32xf32>
      %c0_62 = arith.constant 0 : index
      %c0_63 = arith.constant 0 : index
      %211 = vector.load %arg6[%c0_62, %c0_63] : memref<8x32xf32, #tpu.memory_space<vmem>>, vector<8x32xf32>
      tpu.vector_store %arg6[%c0_62, %c0_63], %210 {strides = array<i32>} : memref<8x32xf32, #tpu.memory_space<vmem>>, vector<8x32xf32>,
    } else {
    }
    %c0 = arith.constant 0 : index
    %c0_1 = arith.constant 0 : index
    %3 = vector.load %arg3[%c0, %c0_1] : memref<32x128xf32, #tpu.memory_space<vmem>>, vector<32x128xf32>
    %c0_2 = arith.constant 0 : index
    %c0_3 = arith.constant 0 : index
    %4 = vector.load %arg5[%c0_2, %c0_3] : memref<8x32xf32, #tpu.memory_space<vmem>>, vector<8x32xf32>
    %c0_4 = arith.constant 0 : index
    %c0_5 = arith.constant 0 : index
    %5 = vector.load %arg6[%c0_4, %c0_5] : memref<8x32xf32, #tpu.memory_space<vmem>>, vector<8x32xf32>
    %c0_i32_6 = arith.constant 0 : i32
    %6 = arith.index_cast %c0_i32_6 : i32 to index
    %c0_7 = arith.constant 0 : index
    %c0_8 = arith.constant 0 : index
    %7 = vector.load %arg2[%6, %c0_7, %c0_8] : memref<8x8x128xf32, #tpu.memory_space<vmem>>, vector<1x8x128xf32>
    %8 = vector.shape_cast %7 : vector<1x8x128xf32> to vector<8x128xf32>
    %cst = arith.constant dense<0.000000e+00> : vector<8x128xf32>
    %9 = tpu.matmul %4, %3, %cst {dimension_numbers = #tpu.dot_dimension_numbers<[1], [0], [0], [1], [0, 0, 1, 1], [], []>} : vector<8x32xf32>, vector<32x128xf32>, vector<8x128xf32> -> vector<8x128xf32>
    %10 = arith.addf %8, %9 : vector<8x128xf32>
    %11 = vector.extract_strided_slice %10 {offsets = [0, 0], sizes = [8, 96], strides = [1, 1]} : vector<8x128xf32> to vector<8x96xf32>
    %12 = arith.negf %11 : vector<8x96xf32>
    %13 = math.exp %12 : vector<8x96xf32>
    %cst_9 = arith.constant 1.000000e+00 : f32
    %14 = vector.broadcast %cst_9 : f32 to vector<8x96xf32>
    %15 = arith.addf %14, %13 : vector<8x96xf32>
    %16 = arith.divf %14, %15 : vector<8x96xf32>
    %17 = vector.extract_strided_slice %10 {offsets = [0, 96], sizes = [8, 32], strides = [1, 1]} : vector<8x128xf32> to vector<8x32xf32>
    %18 = math.tanh %17 : vector<8x32xf32>
    %19 = vector.extract_strided_slice %16 {offsets = [0, 0], sizes = [8, 32], strides = [1, 1]} : vector<8x96xf32> to vector<8x32xf32>
    %20 = vector.extract_strided_slice %16 {offsets = [0, 32], sizes = [8, 32], strides = [1, 1]} : vector<8x96xf32> to vector<8x32xf32>
    %21 = vector.extract_strided_slice %16 {offsets = [0, 64], sizes = [8, 32], strides = [1, 1]} : vector<8x96xf32> to vector<8x32xf32>
    %22 = arith.mulf %20, %5 : vector<8x32xf32>
    %23 = arith.mulf %19, %18 : vector<8x32xf32>
    %24 = arith.addf %22, %23 : vector<8x32xf32>
    %25 = math.tanh %24 : vector<8x32xf32>
    %26 = arith.mulf %21, %25 : vector<8x32xf32>
    %c0_10 = arith.constant 0 : index
    %27 = arith.index_cast %c0_i32_6 : i32 to index
    %c0_11 = arith.constant 0 : index
    %28 = vector.load %arg4[%c0_10, %27, %c0_11] : memref<8x8x32xf32, #tpu.memory_space<vmem>>, vector<8x1x32xf32>
    %29 = vector.shape_cast %28 : vector<8x1x32xf32> to vector<8x32xf32>
    %30 = vector.shape_cast %26 : vector<8x32xf32> to vector<8x1x32xf32>
    tpu.vector_store %arg4[%c0_10, %27, %c0_11], %30 {strides = array<i32>} : memref<8x8x32xf32, #tpu.memory_space<vmem>>, vector<8x1x32xf32>,
    %c1_i32 = arith.constant 1 : i32
    %31 = arith.index_cast %c1_i32 : i32 to index
    %c0_12 = arith.constant 0 : index
    %c0_13 = arith.constant 0 : index
    %32 = vector.load %arg2[%31, %c0_12, %c0_13] : memref<8x8x128xf32, #tpu.memory_space<vmem>>, vector<1x8x128xf32>
    %33 = vector.shape_cast %32 : vector<1x8x128xf32> to vector<8x128xf32>
    %cst_14 = arith.constant dense<0.000000e+00> : vector<8x128xf32>
    %34 = tpu.matmul %26, %3, %cst_14 {dimension_numbers = #tpu.dot_dimension_numbers<[1], [0], [0], [1], [0, 0, 1, 1], [], []>} : vector<8x32xf32>, vector<32x128xf32>, vector<8x128xf32> -> vector<8x128xf32>
    %35 = arith.addf %33, %34 : vector<8x128xf32>
    %36 = vector.extract_strided_slice %35 {offsets = [0, 0], sizes = [8, 96], strides = [1, 1]} : vector<8x128xf32> to vector<8x96xf32>
    %37 = arith.negf %36 : vector<8x96xf32>
    %38 = math.exp %37 : vector<8x96xf32>
    %cst_15 = arith.constant 1.000000e+00 : f32
    %39 = vector.broadcast %cst_15 : f32 to vector<8x96xf32>
    %40 = arith.addf %39, %38 : vector<8x96xf32>
    %41 = arith.divf %39, %40 : vector<8x96xf32>
    %42 = vector.extract_strided_slice %35 {offsets = [0, 96], sizes = [8, 32], strides = [1, 1]} : vector<8x128xf32> to vector<8x32xf32>
    %43 = math.tanh %42 : vector<8x32xf32>
    %44 = vector.extract_strided_slice %41 {offsets = [0, 0], sizes = [8, 32], strides = [1, 1]} : vector<8x96xf32> to vector<8x32xf32>
    %45 = vector.extract_strided_slice %41 {offsets = [0, 32], sizes = [8, 32], strides = [1, 1]} : vector<8x96xf32> to vector<8x32xf32>
    %46 = vector.extract_strided_slice %41 {offsets = [0, 64], sizes = [8, 32], strides = [1, 1]} : vector<8x96xf32> to vector<8x32xf32>
    %47 = arith.mulf %45, %24 : vector<8x32xf32>
    %48 = arith.mulf %44, %43 : vector<8x32xf32>
    %49 = arith.addf %47, %48 : vector<8x32xf32>
    %50 = math.tanh %49 : vector<8x32xf32>
    %51 = arith.mulf %46, %50 : vector<8x32xf32>
    %c0_16 = arith.constant 0 : index
    %52 = arith.index_cast %c1_i32 : i32 to index
    %c0_17 = arith.constant 0 : index
    %53 = vector.load %arg4[%c0_16, %52, %c0_17] : memref<8x8x32xf32, #tpu.memory_space<vmem>>, vector<8x1x32xf32>
    %54 = vector.shape_cast %53 : vector<8x1x32xf32> to vector<8x32xf32>
    %55 = vector.shape_cast %51 : vector<8x32xf32> to vector<8x1x32xf32>
    tpu.vector_store %arg4[%c0_16, %52, %c0_17], %55 {strides = array<i32>} : memref<8x8x32xf32, #tpu.memory_space<vmem>>, vector<8x1x32xf32>,
    %c2_i32 = arith.constant 2 : i32
    %56 = arith.index_cast %c2_i32 : i32 to index
    %c0_18 = arith.constant 0 : index
    %c0_19 = arith.constant 0 : index
    %57 = vector.load %arg2[%56, %c0_18, %c0_19] : memref<8x8x128xf32, #tpu.memory_space<vmem>>, vector<1x8x128xf32>
    %58 = vector.shape_cast %57 : vector<1x8x128xf32> to vector<8x128xf32>
    %cst_20 = arith.constant dense<0.000000e+00> : vector<8x128xf32>
    %59 = tpu.matmul %51, %3, %cst_20 {dimension_numbers = #tpu.dot_dimension_numbers<[1], [0], [0], [1], [0, 0, 1, 1], [], []>} : vector<8x32xf32>, vector<32x128xf32>, vector<8x128xf32> -> vector<8x128xf32>
    %60 = arith.addf %58, %59 : vector<8x128xf32>
    %61 = vector.extract_strided_slice %60 {offsets = [0, 0], sizes = [8, 96], strides = [1, 1]} : vector<8x128xf32> to vector<8x96xf32>
    %62 = arith.negf %61 : vector<8x96xf32>
    %63 = math.exp %62 : vector<8x96xf32>
    %cst_21 = arith.constant 1.000000e+00 : f32
    %64 = vector.broadcast %cst_21 : f32 to vector<8x96xf32>
    %65 = arith.addf %64, %63 : vector<8x96xf32>
    %66 = arith.divf %64, %65 : vector<8x96xf32>
    %67 = vector.extract_strided_slice %60 {offsets = [0, 96], sizes = [8, 32], strides = [1, 1]} : vector<8x128xf32> to vector<8x32xf32>
    %68 = math.tanh %67 : vector<8x32xf32>
    %69 = vector.extract_strided_slice %66 {offsets = [0, 0], sizes = [8, 32], strides = [1, 1]} : vector<8x96xf32> to vector<8x32xf32>
    %70 = vector.extract_strided_slice %66 {offsets = [0, 32], sizes = [8, 32], strides = [1, 1]} : vector<8x96xf32> to vector<8x32xf32>
    %71 = vector.extract_strided_slice %66 {offsets = [0, 64], sizes = [8, 32], strides = [1, 1]} : vector<8x96xf32> to vector<8x32xf32>
    %72 = arith.mulf %70, %49 : vector<8x32xf32>
    %73 = arith.mulf %69, %68 : vector<8x32xf32>
    %74 = arith.addf %72, %73 : vector<8x32xf32>
    %75 = math.tanh %74 : vector<8x32xf32>
    %76 = arith.mulf %71, %75 : vector<8x32xf32>
    %c0_22 = arith.constant 0 : index
    %77 = arith.index_cast %c2_i32 : i32 to index
    %c0_23 = arith.constant 0 : index
    %78 = vector.load %arg4[%c0_22, %77, %c0_23] : memref<8x8x32xf32, #tpu.memory_space<vmem>>, vector<8x1x32xf32>
    %79 = vector.shape_cast %78 : vector<8x1x32xf32> to vector<8x32xf32>
    %80 = vector.shape_cast %76 : vector<8x32xf32> to vector<8x1x32xf32>
    tpu.vector_store %arg4[%c0_22, %77, %c0_23], %80 {strides = array<i32>} : memref<8x8x32xf32, #tpu.memory_space<vmem>>, vector<8x1x32xf32>,
    %c3_i32 = arith.constant 3 : i32
    %81 = arith.index_cast %c3_i32 : i32 to index
    %c0_24 = arith.constant 0 : index
    %c0_25 = arith.constant 0 : index
    %82 = vector.load %arg2[%81, %c0_24, %c0_25] : memref<8x8x128xf32, #tpu.memory_space<vmem>>, vector<1x8x128xf32>
    %83 = vector.shape_cast %82 : vector<1x8x128xf32> to vector<8x128xf32>
    %cst_26 = arith.constant dense<0.000000e+00> : vector<8x128xf32>
    %84 = tpu.matmul %76, %3, %cst_26 {dimension_numbers = #tpu.dot_dimension_numbers<[1], [0], [0], [1], [0, 0, 1, 1], [], []>} : vector<8x32xf32>, vector<32x128xf32>, vector<8x128xf32> -> vector<8x128xf32>
    %85 = arith.addf %83, %84 : vector<8x128xf32>
    %86 = vector.extract_strided_slice %85 {offsets = [0, 0], sizes = [8, 96], strides = [1, 1]} : vector<8x128xf32> to vector<8x96xf32>
    %87 = arith.negf %86 : vector<8x96xf32>
    %88 = math.exp %87 : vector<8x96xf32>
    %cst_27 = arith.constant 1.000000e+00 : f32
    %89 = vector.broadcast %cst_27 : f32 to vector<8x96xf32>
    %90 = arith.addf %89, %88 : vector<8x96xf32>
    %91 = arith.divf %89, %90 : vector<8x96xf32>
    %92 = vector.extract_strided_slice %85 {offsets = [0, 96], sizes = [8, 32], strides = [1, 1]} : vector<8x128xf32> to vector<8x32xf32>
    %93 = math.tanh %92 : vector<8x32xf32>
    %94 = vector.extract_strided_slice %91 {offsets = [0, 0], sizes = [8, 32], strides = [1, 1]} : vector<8x96xf32> to vector<8x32xf32>
    %95 = vector.extract_strided_slice %91 {offsets = [0, 32], sizes = [8, 32], strides = [1, 1]} : vector<8x96xf32> to vector<8x32xf32>
    %96 = vector.extract_strided_slice %91 {offsets = [0, 64], sizes = [8, 32], strides = [1, 1]} : vector<8x96xf32> to vector<8x32xf32>
    %97 = arith.mulf %95, %74 : vector<8x32xf32>
    %98 = arith.mulf %94, %93 : vector<8x32xf32>
    %99 = arith.addf %97, %98 : vector<8x32xf32>
    %100 = math.tanh %99 : vector<8x32xf32>
    %101 = arith.mulf %96, %100 : vector<8x32xf32>
    %c0_28 = arith.constant 0 : index
    %102 = arith.index_cast %c3_i32 : i32 to index
    %c0_29 = arith.constant 0 : index
    %103 = vector.load %arg4[%c0_28, %102, %c0_29] : memref<8x8x32xf32, #tpu.memory_space<vmem>>, vector<8x1x32xf32>
    %104 = vector.shape_cast %103 : vector<8x1x32xf32> to vector<8x32xf32>
    %105 = vector.shape_cast %101 : vector<8x32xf32> to vector<8x1x32xf32>
    tpu.vector_store %arg4[%c0_28, %102, %c0_29], %105 {strides = array<i32>} : memref<8x8x32xf32, #tpu.memory_space<vmem>>, vector<8x1x32xf32>,
    %c4_i32 = arith.constant 4 : i32
    %106 = arith.index_cast %c4_i32 : i32 to index
    %c0_30 = arith.constant 0 : index
    %c0_31 = arith.constant 0 : index
    %107 = vector.load %arg2[%106, %c0_30, %c0_31] : memref<8x8x128xf32, #tpu.memory_space<vmem>>, vector<1x8x128xf32>
    %108 = vector.shape_cast %107 : vector<1x8x128xf32> to vector<8x128xf32>
    %cst_32 = arith.constant dense<0.000000e+00> : vector<8x128xf32>
    %109 = tpu.matmul %101, %3, %cst_32 {dimension_numbers = #tpu.dot_dimension_numbers<[1], [0], [0], [1], [0, 0, 1, 1], [], []>} : vector<8x32xf32>, vector<32x128xf32>, vector<8x128xf32> -> vector<8x128xf32>
    %110 = arith.addf %108, %109 : vector<8x128xf32>
    %111 = vector.extract_strided_slice %110 {offsets = [0, 0], sizes = [8, 96], strides = [1, 1]} : vector<8x128xf32> to vector<8x96xf32>
    %112 = arith.negf %111 : vector<8x96xf32>
    %113 = math.exp %112 : vector<8x96xf32>
    %cst_33 = arith.constant 1.000000e+00 : f32
    %114 = vector.broadcast %cst_33 : f32 to vector<8x96xf32>
    %115 = arith.addf %114, %113 : vector<8x96xf32>
    %116 = arith.divf %114, %115 : vector<8x96xf32>
    %117 = vector.extract_strided_slice %110 {offsets = [0, 96], sizes = [8, 32], strides = [1, 1]} : vector<8x128xf32> to vector<8x32xf32>
    %118 = math.tanh %117 : vector<8x32xf32>
    %119 = vector.extract_strided_slice %116 {offsets = [0, 0], sizes = [8, 32], strides = [1, 1]} : vector<8x96xf32> to vector<8x32xf32>
    %120 = vector.extract_strided_slice %116 {offsets = [0, 32], sizes = [8, 32], strides = [1, 1]} : vector<8x96xf32> to vector<8x32xf32>
    %121 = vector.extract_strided_slice %116 {offsets = [0, 64], sizes = [8, 32], strides = [1, 1]} : vector<8x96xf32> to vector<8x32xf32>
    %122 = arith.mulf %120, %99 : vector<8x32xf32>
    %123 = arith.mulf %119, %118 : vector<8x32xf32>
    %124 = arith.addf %122, %123 : vector<8x32xf32>
    %125 = math.tanh %124 : vector<8x32xf32>
    %126 = arith.mulf %121, %125 : vector<8x32xf32>
    %c0_34 = arith.constant 0 : index
    %127 = arith.index_cast %c4_i32 : i32 to index
    %c0_35 = arith.constant 0 : index
    %128 = vector.load %arg4[%c0_34, %127, %c0_35] : memref<8x8x32xf32, #tpu.memory_space<vmem>>, vector<8x1x32xf32>
    %129 = vector.shape_cast %128 : vector<8x1x32xf32> to vector<8x32xf32>
    %130 = vector.shape_cast %126 : vector<8x32xf32> to vector<8x1x32xf32>
    tpu.vector_store %arg4[%c0_34, %127, %c0_35], %130 {strides = array<i32>} : memref<8x8x32xf32, #tpu.memory_space<vmem>>, vector<8x1x32xf32>,
    %c5_i32 = arith.constant 5 : i32
    %131 = arith.index_cast %c5_i32 : i32 to index
    %c0_36 = arith.constant 0 : index
    %c0_37 = arith.constant 0 : index
    %132 = vector.load %arg2[%131, %c0_36, %c0_37] : memref<8x8x128xf32, #tpu.memory_space<vmem>>, vector<1x8x128xf32>
    %133 = vector.shape_cast %132 : vector<1x8x128xf32> to vector<8x128xf32>
    %cst_38 = arith.constant dense<0.000000e+00> : vector<8x128xf32>
    %134 = tpu.matmul %126, %3, %cst_38 {dimension_numbers = #tpu.dot_dimension_numbers<[1], [0], [0], [1], [0, 0, 1, 1], [], []>} : vector<8x32xf32>, vector<32x128xf32>, vector<8x128xf32> -> vector<8x128xf32>
    %135 = arith.addf %133, %134 : vector<8x128xf32>
    %136 = vector.extract_strided_slice %135 {offsets = [0, 0], sizes = [8, 96], strides = [1, 1]} : vector<8x128xf32> to vector<8x96xf32>
    %137 = arith.negf %136 : vector<8x96xf32>
    %138 = math.exp %137 : vector<8x96xf32>
    %cst_39 = arith.constant 1.000000e+00 : f32
    %139 = vector.broadcast %cst_39 : f32 to vector<8x96xf32>
    %140 = arith.addf %139, %138 : vector<8x96xf32>
    %141 = arith.divf %139, %140 : vector<8x96xf32>
    %142 = vector.extract_strided_slice %135 {offsets = [0, 96], sizes = [8, 32], strides = [1, 1]} : vector<8x128xf32> to vector<8x32xf32>
    %143 = math.tanh %142 : vector<8x32xf32>
    %144 = vector.extract_strided_slice %141 {offsets = [0, 0], sizes = [8, 32], strides = [1, 1]} : vector<8x96xf32> to vector<8x32xf32>
    %145 = vector.extract_strided_slice %141 {offsets = [0, 32], sizes = [8, 32], strides = [1, 1]} : vector<8x96xf32> to vector<8x32xf32>
    %146 = vector.extract_strided_slice %141 {offsets = [0, 64], sizes = [8, 32], strides = [1, 1]} : vector<8x96xf32> to vector<8x32xf32>
    %147 = arith.mulf %145, %124 : vector<8x32xf32>
    %148 = arith.mulf %144, %143 : vector<8x32xf32>
    %149 = arith.addf %147, %148 : vector<8x32xf32>
    %150 = math.tanh %149 : vector<8x32xf32>
    %151 = arith.mulf %146, %150 : vector<8x32xf32>
    %c0_40 = arith.constant 0 : index
    %152 = arith.index_cast %c5_i32 : i32 to index
    %c0_41 = arith.constant 0 : index
    %153 = vector.load %arg4[%c0_40, %152, %c0_41] : memref<8x8x32xf32, #tpu.memory_space<vmem>>, vector<8x1x32xf32>
    %154 = vector.shape_cast %153 : vector<8x1x32xf32> to vector<8x32xf32>
    %155 = vector.shape_cast %151 : vector<8x32xf32> to vector<8x1x32xf32>
    tpu.vector_store %arg4[%c0_40, %152, %c0_41], %155 {strides = array<i32>} : memref<8x8x32xf32, #tpu.memory_space<vmem>>, vector<8x1x32xf32>,
    %c6_i32 = arith.constant 6 : i32
    %156 = arith.index_cast %c6_i32 : i32 to index
    %c0_42 = arith.constant 0 : index
    %c0_43 = arith.constant 0 : index
    %157 = vector.load %arg2[%156, %c0_42, %c0_43] : memref<8x8x128xf32, #tpu.memory_space<vmem>>, vector<1x8x128xf32>
    %158 = vector.shape_cast %157 : vector<1x8x128xf32> to vector<8x128xf32>
    %cst_44 = arith.constant dense<0.000000e+00> : vector<8x128xf32>
    %159 = tpu.matmul %151, %3, %cst_44 {dimension_numbers = #tpu.dot_dimension_numbers<[1], [0], [0], [1], [0, 0, 1, 1], [], []>} : vector<8x32xf32>, vector<32x128xf32>, vector<8x128xf32> -> vector<8x128xf32>
    %160 = arith.addf %158, %159 : vector<8x128xf32>
    %161 = vector.extract_strided_slice %160 {offsets = [0, 0], sizes = [8, 96], strides = [1, 1]} : vector<8x128xf32> to vector<8x96xf32>
    %162 = arith.negf %161 : vector<8x96xf32>
    %163 = math.exp %162 : vector<8x96xf32>
    %cst_45 = arith.constant 1.000000e+00 : f32
    %164 = vector.broadcast %cst_45 : f32 to vector<8x96xf32>
    %165 = arith.addf %164, %163 : vector<8x96xf32>
    %166 = arith.divf %164, %165 : vector<8x96xf32>
    %167 = vector.extract_strided_slice %160 {offsets = [0, 96], sizes = [8, 32], strides = [1, 1]} : vector<8x128xf32> to vector<8x32xf32>
    %168 = math.tanh %167 : vector<8x32xf32>
    %169 = vector.extract_strided_slice %166 {offsets = [0, 0], sizes = [8, 32], strides = [1, 1]} : vector<8x96xf32> to vector<8x32xf32>
    %170 = vector.extract_strided_slice %166 {offsets = [0, 32], sizes = [8, 32], strides = [1, 1]} : vector<8x96xf32> to vector<8x32xf32>
    %171 = vector.extract_strided_slice %166 {offsets = [0, 64], sizes = [8, 32], strides = [1, 1]} : vector<8x96xf32> to vector<8x32xf32>
    %172 = arith.mulf %170, %149 : vector<8x32xf32>
    %173 = arith.mulf %169, %168 : vector<8x32xf32>
    %174 = arith.addf %172, %173 : vector<8x32xf32>
    %175 = math.tanh %174 : vector<8x32xf32>
    %176 = arith.mulf %171, %175 : vector<8x32xf32>
    %c0_46 = arith.constant 0 : index
    %177 = arith.index_cast %c6_i32 : i32 to index
    %c0_47 = arith.constant 0 : index
    %178 = vector.load %arg4[%c0_46, %177, %c0_47] : memref<8x8x32xf32, #tpu.memory_space<vmem>>, vector<8x1x32xf32>
    %179 = vector.shape_cast %178 : vector<8x1x32xf32> to vector<8x32xf32>
    %180 = vector.shape_cast %176 : vector<8x32xf32> to vector<8x1x32xf32>
    tpu.vector_store %arg4[%c0_46, %177, %c0_47], %180 {strides = array<i32>} : memref<8x8x32xf32, #tpu.memory_space<vmem>>, vector<8x1x32xf32>,
    %c7_i32 = arith.constant 7 : i32
    %181 = arith.index_cast %c7_i32 : i32 to index
    %c0_48 = arith.constant 0 : index
    %c0_49 = arith.constant 0 : index
    %182 = vector.load %arg2[%181, %c0_48, %c0_49] : memref<8x8x128xf32, #tpu.memory_space<vmem>>, vector<1x8x128xf32>
    %183 = vector.shape_cast %182 : vector<1x8x128xf32> to vector<8x128xf32>
    %cst_50 = arith.constant dense<0.000000e+00> : vector<8x128xf32>
    %184 = tpu.matmul %176, %3, %cst_50 {dimension_numbers = #tpu.dot_dimension_numbers<[1], [0], [0], [1], [0, 0, 1, 1], [], []>} : vector<8x32xf32>, vector<32x128xf32>, vector<8x128xf32> -> vector<8x128xf32>
    %185 = arith.addf %183, %184 : vector<8x128xf32>
    %186 = vector.extract_strided_slice %185 {offsets = [0, 0], sizes = [8, 96], strides = [1, 1]} : vector<8x128xf32> to vector<8x96xf32>
    %187 = arith.negf %186 : vector<8x96xf32>
    %188 = math.exp %187 : vector<8x96xf32>
    %cst_51 = arith.constant 1.000000e+00 : f32
    %189 = vector.broadcast %cst_51 : f32 to vector<8x96xf32>
    %190 = arith.addf %189, %188 : vector<8x96xf32>
    %191 = arith.divf %189, %190 : vector<8x96xf32>
    %192 = vector.extract_strided_slice %185 {offsets = [0, 96], sizes = [8, 32], strides = [1, 1]} : vector<8x128xf32> to vector<8x32xf32>
    %193 = math.tanh %192 : vector<8x32xf32>
    %194 = vector.extract_strided_slice %191 {offsets = [0, 0], sizes = [8, 32], strides = [1, 1]} : vector<8x96xf32> to vector<8x32xf32>
    %195 = vector.extract_strided_slice %191 {offsets = [0, 32], sizes = [8, 32], strides = [1, 1]} : vector<8x96xf32> to vector<8x32xf32>
    %196 = vector.extract_strided_slice %191 {offsets = [0, 64], sizes = [8, 32], strides = [1, 1]} : vector<8x96xf32> to vector<8x32xf32>
    %197 = arith.mulf %195, %174 : vector<8x32xf32>
    %198 = arith.mulf %194, %193 : vector<8x32xf32>
    %199 = arith.addf %197, %198 : vector<8x32xf32>
    %200 = math.tanh %199 : vector<8x32xf32>
    %201 = arith.mulf %196, %200 : vector<8x32xf32>
    %c0_52 = arith.constant 0 : index
    %202 = arith.index_cast %c7_i32 : i32 to index
    %c0_53 = arith.constant 0 : index
    %203 = vector.load %arg4[%c0_52, %202, %c0_53] : memref<8x8x32xf32, #tpu.memory_space<vmem>>, vector<8x1x32xf32>
    %204 = vector.shape_cast %203 : vector<8x1x32xf32> to vector<8x32xf32>
    %205 = vector.shape_cast %201 : vector<8x32xf32> to vector<8x1x32xf32>
    tpu.vector_store %arg4[%c0_52, %202, %c0_53], %205 {strides = array<i32>} : memref<8x8x32xf32, #tpu.memory_space<vmem>>, vector<8x1x32xf32>,
    %c8_i32 = arith.constant 8 : i32
    %c0_54 = arith.constant 0 : index
    %c0_55 = arith.constant 0 : index
    %206 = vector.load %arg5[%c0_54, %c0_55] : memref<8x32xf32, #tpu.memory_space<vmem>>, vector<8x32xf32>
    tpu.vector_store %arg5[%c0_54, %c0_55], %201 {strides = array<i32>} : memref<8x32xf32, #tpu.memory_space<vmem>>, vector<8x32xf32>,
    %c0_56 = arith.constant 0 : index
    %c0_57 = arith.constant 0 : index
    %207 = vector.load %arg6[%c0_56, %c0_57] : memref<8x32xf32, #tpu.memory_space<vmem>>, vector<8x32xf32>
    tpu.vector_store %arg6[%c0_56, %c0_57], %199 {strides = array<i32>} : memref<8x32xf32, #tpu.memory_space<vmem>>, vector<8x32xf32>,
    return
  }
  func.func @transform_0(%arg0: i32, %arg1: i32) -> (i32, i32, i32) {
    %c0_i32 = arith.constant 0 : i32
    %c0_i32_0 = arith.constant 0 : i32
    return %arg1, %arg0, %c0_i32 : i32, i32, i32
  }
  func.func @transform_1(%arg0: i32, %arg1: i32) -> (i32, i32) {
    %c0_i32 = arith.constant 0 : i32
    %c0_i32_0 = arith.constant 0 : i32
    %c0_i32_1 = arith.constant 0 : i32
    return %c0_i32, %c0_i32_0 : i32, i32
  }
  func.func @transform_2(%arg0: i32, %arg1: i32) -> (i32, i32, i32) {
    %c0_i32 = arith.constant 0 : i32
    %c0_i32_0 = arith.constant 0 : i32
    return %arg0, %arg1, %c0_i32 : i32, i32, i32
  }
}

</mosaic_0001>

<bundles_post_ra>
// kernel: seq2seq_encoder_forward.1
= control target key start
LH: loop header
LB: loop body
LE: loop exit
PB: predicated region body
PF: predicated region fallthrough
CT: control target
= control target key end

     0   :  { %vm15_vm0 = vcmask 261120   ;;  %v1028_v2 = vmov 0.0   ;;  %s1029_s18 = smov 32   ;;  %s1030_s19 = smov 64   ;;  %s1539_s1 = inlined_call_operand.vmem [shape: f32[32,128], index: 1, kind: input, shape index: {}]   ;;  %s1540_s0 = inlined_call_operand.vmem [shape: f32[8,8,128], index: 0, kind: input, shape index: {}]   ;;  %s1541_s2 = inlined_call_operand.vmem [shape: f32[8,8,32], index: 2, kind: output, shape index: {}]  }
   0x1   :  { %v21_v0 = vld [vmem:[%s1539_s1 + $0x18] sm:$0xff]  ;;  %v20_v1 = vld [vmem:[%s1539_s1 + $0x10] sm:$0xff]  ;;  %16 = vst.msk [vmem:[#allocation2] sm:$0xff] %vm15_vm0, %v1028_v2  ;;  %v19_v3 = vld [vmem:[%s1539_s1 + $0x8] sm:$0xff]  ;;  %s1031_s7 = smov 96  }
   0x2   :  { %41 = vmatpush.msra.mxu0 %v21_v0  ;;  %17 = vst.msk [vmem:[#allocation3] sm:$0xff] %vm15_vm0, %v1028_v2  ;;  %158 = vmatpush.msra.mxu1 %v21_v0  ;;  %v18_v4 = vld [vmem:[%s1539_s1] sm:$0xff]  ;;  %v939_v34 = vld [vmem:[%s1540_s0 + $0x8] sm:$0xff]  ;;  %v942_v60 = vld [vmem:[%s1540_s0 + $0x10] sm:$0xff] }
   0x3   :  { %270 = vmatpush.msra.mxu2 %v21_v0  ;;  %382 = vmatpush.msra.mxu3 %v21_v0  ;;  %v24_v6 = vld [vmem:[%s1540_s0] sm:$0xff] }
   0x4   :  { %42 = vmatpush.msra.mxu0 %v20_v1  ;;  %159 = vmatpush.msra.mxu1 %v20_v1 }
   0x5   :  { %271 = vmatpush.msra.mxu2 %v20_v1  ;;  %383 = vmatpush.msra.mxu3 %v20_v1 }
   0x6   :  { %43 = vmatpush.msra.mxu0 %v19_v3  ;;  %160 = vmatpush.msra.mxu1 %v19_v3 }
   0x7   :  { %272 = vmatpush.msra.mxu2 %v19_v3  ;;  %384 = vmatpush.msra.mxu3 %v19_v3 }
   0x8   :  { %44 = vmatpush.msra.mxu0 %v18_v4  ;;  %v22_v5 = vld [vmem:[#allocation2] sm:$0xff]  ;;  %161 = vmatpush.msra.mxu1 %v18_v4 }
   0x9   :  { %937 = vmatmul.msk.f32.vlgmr.msra.gmra.mxu0 %vm15_vm0, %v22_v5  ;;  %273 = vmatpush.msra.mxu2 %v18_v4  ;;  %v23_v10 = vld [vmem:[#allocation3] sm:$0xff] }
   0xa   :  { %385 = vmatpush.msra.mxu3 %v18_v4  ;;  %494 = vmatpush.msrb.mxu0 %v21_v0 }
   0xb   :  { %606 = vmatpush.msrb.mxu1 %v21_v0  ;;  %718 = vmatpush.msrb.mxu2 %v21_v0 }
   0xc   :  { %495 = vmatpush.msrb.mxu0 %v20_v1  ;;  %830 = vmatpush.msrb.mxu3 %v21_v0 }
   0xd   :  { %607 = vmatpush.msrb.mxu1 %v20_v1  ;;  %719 = vmatpush.msrb.mxu2 %v20_v1 }
   0xe   :  { %496 = vmatpush.msrb.mxu0 %v19_v3  ;;  %831 = vmatpush.msrb.mxu3 %v20_v1 }
   0xf   :  { %608 = vmatpush.msrb.mxu1 %v19_v3  ;;  %720 = vmatpush.msrb.mxu2 %v19_v3 }
  0x10   :  { %497 = vmatpush.msrb.mxu0 %v18_v4  ;;  %832 = vmatpush.msrb.mxu3 %v19_v3 }
  0x11   :  { %609 = vmatpush.msrb.mxu1 %v18_v4  ;;  %721 = vmatpush.msrb.mxu2 %v18_v4 }
  0x12   :  { %833 = vmatpush.msrb.mxu3 %v18_v4 }
  0x86   :  { %v46_v7 = vpop.f32.mrf.mxu0 }
  0x87   :  { %v49_v8 = vadd.f32 %v46_v7, %v24_v6 }
  0x89   :  { %964 = vtanh.f32 %v49_v8  ;;  %v938_v11 = vmul.f32 -1.442695, %v49_v8 }
  0x8b   :  { %966 = vpow2.f32 %v938_v11 }
  0x8f   :  { %v965_v9 = vpop.eup %964 }
  0x90   :  { %76 = vrot.lane.b32.xlu0 %v965_v9, %s1029_s18 }
  0x91   :  { %v967_v12 = vpop.eup %966 }
  0x92   :  { %v53_v13 = vadd.f32 1.0, %v967_v12 }
  0x94   :  { %968 = vrcp.f32 %v53_v13  ;;  %v65_v19 = vand.u32 2147483648, %v53_v13  ;;  %vm59_vm2 = vweird.f32 %v53_v13  ;;  %v63_v20 = vand.u32 2147483647, %v53_v13 }
  0x96   :  { %v66_v22 = vor.u32 1.1754944e-38, %v65_v19  ;;  %vm64_vm4 = vcmp.eq.f32.partialorder %v63_v20, 8.507059e+37 }
  0x98   :  { %71 = vrot.lane.b32.xlu0 %v23_v10, %s1029_s18 }
  0x9a   :  { %v969_v14 = vpop.eup %968 }
  0x9b   :  { %v55_v15 = vmul.f32 %v969_v14, %v53_v13  ;;  %vm60_vm1 = vweird.f32 %v969_v14 }
  0x9c   :  { %vm61_vm3 = vmor %vm59_vm2, %vm60_vm1 }
  0x9d   :  { %v56_v16 = vsub.f32 1.0, %v55_v15 }
  0x9f   :  { %v57_v17 = vmul.f32 %v969_v14, %v56_v16 }
  0xa1   :  { %v58_v18 = vadd.f32 %v969_v14, %v57_v17 }
  0xa3   :  { %v62_v21 = vsel %vm61_vm3, %v969_v14, %v58_v18 }
  0xa4   :  { %v67_v24 = vsel %vm64_vm4, %v66_v22, %v62_v21  ;;  %v945_v22 = vld [vmem:[%s1540_s0 + $0x18] sm:$0xff] }
 0x102   :  { %v77_v23 = vpop.permute.xlu0 %76 }
 0x103   :  { %v79_v25 = vmul.f32 %v77_v23, %v67_v24 }
 0x105   :  { %81 = vrot.lane.b32.xlu1 %v79_v25, %s1029_s18 }
 0x10a   :  { %v72_v26 = vpop.permute.xlu0 %71 }
 0x10b   :  { %v74_v27 = vmul.f32 %v72_v26, %v67_v24 }
 0x177   :  { %v82_v28 = vpop.permute.xlu1 %81 }
 0x178   :  { %v84_v29 = vadd.f32 %v82_v28, %v74_v27 }
 0x17a   :  { %970 = vtanh.f32 %v84_v29 }
 0x180   :  { %v971_v30 = vpop.eup %970 }
 0x181   :  { %87 = vrot.lane.b32.xlu1 %v971_v30, %s1029_s18 }
 0x1f3   :  { %v88_v31 = vpop.permute.xlu1 %87 }
 0x1f4   :  { %v1069_v32 = vmul.f32 %v88_v31, %v67_v24 }
 0x1f6   :  { %142 = vrot.lane.b32.xlu2 %v1069_v32, %s1030_s19 }
 0x250   :  { %v143_v33 = vpop.permute.xlu2 %142 }
 0x251   :  { %940 = vmatmul.msk.f32.vlgmr.msra.gmra.mxu1 %vm15_vm0, %v143_v33 }
 0x2ce   :  { %v163_v35 = vpop.f32.mrf.mxu1 }
 0x2cf   :  { %v166_v36 = vadd.f32 %v939_v34, %v163_v35 }
 0x2d1   :  { %972 = vtanh.f32 %v166_v36  ;;  %v941_v38 = vmul.f32 -1.442695, %v166_v36 }
 0x2d3   :  { %974 = vpow2.f32 %v941_v38 }
 0x2d7   :  { %v973_v37 = vpop.eup %972 }
 0x2d8   :  { %189 = vrot.lane.b32.xlu2 %v973_v37, %s1029_s18 }
 0x2d9   :  { %v975_v39 = vpop.eup %974 }
 0x2da   :  { %v170_v40 = vadd.f32 1.0, %v975_v39 }
 0x2dc   :  { %976 = vrcp.f32 %v170_v40  ;;  %v182_v46 = vand.u32 2147483648, %v170_v40  ;;  %vm176_vm6 = vweird.f32 %v170_v40  ;;  %v180_v47 = vand.u32 2147483647, %v170_v40 }
 0x2de   :  { %v183_v49 = vor.u32 1.1754944e-38, %v182_v46  ;;  %vm181_vm8 = vcmp.eq.f32.partialorder %v180_v47, 8.507059e+37 }
 0x2e2   :  { %v977_v41 = vpop.eup %976 }
 0x2e3   :  { %v172_v42 = vmul.f32 %v977_v41, %v170_v40  ;;  %vm177_vm5 = vweird.f32 %v977_v41 }
 0x2e4   :  { %vm178_vm7 = vmor %vm176_vm6, %vm177_vm5 }
 0x2e5   :  { %v173_v43 = vsub.f32 1.0, %v172_v42 }
 0x2e7   :  { %v174_v44 = vmul.f32 %v977_v41, %v173_v43 }
 0x2e9   :  { %v175_v45 = vadd.f32 %v977_v41, %v174_v44 }
 0x2eb   :  { %v179_v48 = vsel %vm178_vm7, %v977_v41, %v175_v45 }
 0x2ec   :  { %v184_v51 = vsel %vm181_vm8, %v183_v49, %v179_v48  ;;  %v948_v49 = vld [vmem:[%s1540_s0 + $0x20] sm:$0xff] }
 0x2ed   :  { %v187_v53 = vmul.f32 %v184_v51, %v84_v29 }
 0x332   :  { %v190_v50 = vpop.permute.xlu2 %189 }
 0x333   :  { %v192_v52 = vmul.f32 %v190_v50, %v184_v51 }
 0x335   :  { %194 = vrot.lane.b32.xlu0 %v192_v52, %s1029_s18 }
 0x3a7   :  { %v195_v54 = vpop.permute.xlu0 %194 }
 0x3a8   :  { %v197_v55 = vadd.f32 %v195_v54, %v187_v53 }
 0x3aa   :  { %978 = vtanh.f32 %v197_v55 }
 0x3b0   :  { %v979_v56 = vpop.eup %978 }
 0x3b1   :  { %200 = vrot.lane.b32.xlu1 %v979_v56, %s1029_s18 }
 0x423   :  { %v201_v57 = vpop.permute.xlu1 %200 }
 0x424   :  { %v1080_v58 = vmul.f32 %v201_v57, %v184_v51 }
 0x426   :  { %254 = vrot.lane.b32.xlu2 %v1080_v58, %s1030_s19 }
 0x480   :  { %v255_v59 = vpop.permute.xlu2 %254 }
 0x481   :  { %943 = vmatmul.msk.f32.vlgmr.msra.gmra.mxu2 %vm15_vm0, %v255_v59 }
 0x504   :  { %v275_v61 = vpop.f32.mrf.mxu2 }
 0x505   :  { %v278_v62 = vadd.f32 %v942_v60, %v275_v61 }
 0x507   :  { %980 = vtanh.f32 %v278_v62  ;;  %v944_v0 = vmul.f32 -1.442695, %v278_v62 }
 0x509   :  { %982 = vpow2.f32 %v944_v0 }
 0x50d   :  { %v981_v63 = vpop.eup %980 }
 0x50e   :  { %301 = vrot.lane.b32.xlu0 %v981_v63, %s1029_s18 }
 0x50f   :  { %v983_v1 = vpop.eup %982 }
 0x510   :  { %v282_v2 = vadd.f32 1.0, %v983_v1 }
 0x512   :  { %984 = vrcp.f32 %v282_v2  ;;  %v294_v8 = vand.u32 2147483648, %v282_v2  ;;  %vm288_vm10 = vweird.f32 %v282_v2  ;;  %v292_v9 = vand.u32 2147483647, %v282_v2 }
 0x514   :  { %v295_v11 = vor.u32 1.1754944e-38, %v294_v8  ;;  %vm293_vm12 = vcmp.eq.f32.partialorder %v292_v9, 8.507059e+37 }
 0x518   :  { %v985_v3 = vpop.eup %984 }
 0x519   :  { %v284_v4 = vmul.f32 %v985_v3, %v282_v2  ;;  %vm289_vm9 = vweird.f32 %v985_v3 }
 0x51a   :  { %vm290_vm11 = vmor %vm288_vm10, %vm289_vm9 }
 0x51b   :  { %v285_v5 = vsub.f32 1.0, %v284_v4 }
 0x51d   :  { %v286_v6 = vmul.f32 %v985_v3, %v285_v5 }
 0x51f   :  { %v287_v7 = vadd.f32 %v985_v3, %v286_v6 }
 0x521   :  { %v291_v10 = vsel %vm290_vm11, %v985_v3, %v287_v7 }
 0x522   :  { %v296_v13 = vsel %vm293_vm12, %v295_v11, %v291_v10 }
 0x523   :  { %v299_v15 = vmul.f32 %v296_v13, %v197_v55 }
 0x580   :  { %v302_v12 = vpop.permute.xlu0 %301 }
 0x581   :  { %v304_v14 = vmul.f32 %v302_v12, %v296_v13  ;;  %v951_v12 = vld [vmem:[%s1540_s0 + $0x28] sm:$0xff] }
 0x583   :  { %306 = vrot.lane.b32.xlu1 %v304_v14, %s1029_s18 }
 0x5f5   :  { %v307_v16 = vpop.permute.xlu1 %306 }
 0x5f6   :  { %v309_v17 = vadd.f32 %v307_v16, %v299_v15 }
 0x5f8   :  { %986 = vtanh.f32 %v309_v17 }
 0x5fe   :  { %v987_v18 = vpop.eup %986 }
 0x5ff   :  { %312 = vrot.lane.b32.xlu2 %v987_v18, %s1029_s18 }
 0x659   :  { %v313_v19 = vpop.permute.xlu2 %312 }
 0x65a   :  { %v1091_v20 = vmul.f32 %v313_v19, %v296_v13 }
 0x65c   :  { %366 = vrot.lane.b32.xlu0 %v1091_v20, %s1030_s19 }
 0x6ce   :  { %v367_v21 = vpop.permute.xlu0 %366 }
 0x6cf   :  { %946 = vmatmul.msk.f32.vlgmr.msra.gmra.mxu3 %vm15_vm0, %v367_v21 }
 0x752   :  { %v387_v23 = vpop.f32.mrf.mxu3 }
 0x753   :  { %v390_v24 = vadd.f32 %v945_v22, %v387_v23 }
 0x755   :  { %988 = vtanh.f32 %v390_v24  ;;  %v947_v26 = vmul.f32 -1.442695, %v390_v24 }
 0x757   :  { %990 = vpow2.f32 %v947_v26 }
 0x75b   :  { %v989_v25 = vpop.eup %988 }
 0x75c   :  { %413 = vrot.lane.b32.xlu1 %v989_v25, %s1029_s18 }
 0x75d   :  { %v991_v27 = vpop.eup %990 }
 0x75e   :  { %v394_v28 = vadd.f32 1.0, %v991_v27 }
 0x760   :  { %992 = vrcp.f32 %v394_v28  ;;  %v406_v35 = vand.u32 2147483648, %v394_v28  ;;  %vm400_vm14 = vweird.f32 %v394_v28  ;;  %v404_v36 = vand.u32 2147483647, %v394_v28 }
 0x762   :  { %v407_v38 = vor.u32 1.1754944e-38, %v406_v35  ;;  %vm405_vm1 = vcmp.eq.f32.partialorder %v404_v36, 8.507059e+37 }
 0x766   :  { %v993_v29 = vpop.eup %992 }
 0x767   :  { %v396_v30 = vmul.f32 %v993_v29, %v394_v28  ;;  %vm401_vm13 = vweird.f32 %v993_v29 }
 0x768   :  { %vm402_vm15 = vmor %vm400_vm14, %vm401_vm13  ;;  %vm131_vm14 = vcmask 253952  }
 0x769   :  { %v397_v31 = vsub.f32 1.0, %v396_v30 }
 0x76b   :  { %v398_v33 = vmul.f32 %v993_v29, %v397_v31 }
 0x76d   :  { %v399_v34 = vadd.f32 %v993_v29, %v398_v33 }
 0x76f   :  { %v403_v37 = vsel %vm402_vm15, %v993_v29, %v399_v34 }
 0x770   :  { %v408_v40 = vsel %vm405_vm1, %v407_v38, %v403_v37 }
 0x771   :  { %v411_v42 = vmul.f32 %v408_v40, %v309_v17 }
 0x7ce   :  { %v414_v39 = vpop.permute.xlu1 %413 }
 0x7cf   :  { %v416_v41 = vmul.f32 %v414_v39, %v408_v40 }
 0x7d1   :  { %418 = vrot.lane.b32.xlu2 %v416_v41, %s1029_s18 }
 0x82b   :  { %v419_v43 = vpop.permute.xlu2 %418 }
 0x82c   :  { %v421_v44 = vadd.f32 %v419_v43, %v411_v42 }
 0x82e   :  { %994 = vtanh.f32 %v421_v44 }
 0x834   :  { %v995_v45 = vpop.eup %994 }
 0x835   :  { %424 = vrot.lane.b32.xlu0 %v995_v45, %s1029_s18 }
 0x8a7   :  { %v425_v46 = vpop.permute.xlu0 %424 }
 0x8a8   :  { %v1102_v47 = vmul.f32 %v425_v46, %v408_v40  ;;  %v954_v40 = vld [vmem:[%s1540_s0 + $0x30] sm:$0xff] }
 0x8aa   :  { %478 = vrot.lane.b32.xlu1 %v1102_v47, %s1030_s19 }
 0x91c   :  { %v479_v48 = vpop.permute.xlu1 %478 }
 0x91d   :  { %949 = vmatmul.msk.f32.vlgmr.msrb.gmra.mxu0 %vm15_vm0, %v479_v48 }
 0x99a   :  { %v499_v50 = vpop.f32.mrf.mxu0 }
 0x99b   :  { %v502_v51 = vadd.f32 %v948_v49, %v499_v50 }
 0x99d   :  { %996 = vtanh.f32 %v502_v51  ;;  %v950_v53 = vmul.f32 -1.442695, %v502_v51 }
 0x99f   :  { %998 = vpow2.f32 %v950_v53 }
 0x9a3   :  { %v997_v52 = vpop.eup %996 }
 0x9a4   :  { %525 = vrot.lane.b32.xlu2 %v997_v52, %s1029_s18 }
 0x9a5   :  { %v999_v54 = vpop.eup %998 }
 0x9a6   :  { %v506_v55 = vadd.f32 1.0, %v999_v54 }
 0x9a8   :  { %1000 = vrcp.f32 %v506_v55  ;;  %v518_v62 = vand.u32 2147483648, %v506_v55  ;;  %vm512_vm3 = vweird.f32 %v506_v55  ;;  %v516_v63 = vand.u32 2147483647, %v506_v55 }
 0x9aa   :  { %v519_v1 = vor.u32 1.1754944e-38, %v518_v62  ;;  %vm517_vm5 = vcmp.eq.f32.partialorder %v516_v63, 8.507059e+37  ;;  %v94_v62 = vrot.slane %v1069_v32, 3 }
 0x9ac   :  { %v102_v63 = vperm.slane %v94_v62, 0 }
 0x9ae   :  { %v1001_v56 = vpop.eup %1000 }
 0x9af   :  { %v508_v57 = vmul.f32 %v1001_v56, %v506_v55  ;;  %vm513_vm2 = vweird.f32 %v1001_v56 }
 0x9b0   :  { %vm514_vm4 = vmor %vm512_vm3, %vm513_vm2 }
 0x9b1   :  { %v509_v59 = vsub.f32 1.0, %v508_v57 }
 0x9b3   :  { %v510_v60 = vmul.f32 %v1001_v56, %v509_v59 }
 0x9b5   :  { %v511_v61 = vadd.f32 %v1001_v56, %v510_v60 }
 0x9b7   :  { %v515_v0 = vsel %vm514_vm4, %v1001_v56, %v511_v61  ;;  %v99_v61 = vperm.slane %v1069_v32, 0 }
 0x9b8   :  { %v520_v3 = vsel %vm517_vm5, %v519_v1, %v515_v0  ;;  %v97_v0 = vrot.slane %v1069_v32, 6 }
 0x9b9   :  { %v523_v5 = vmul.f32 %v520_v3, %v421_v44 }
 0x9ba   :  { %v105_v1 = vperm.slane %v97_v0, 0  ;;  %v436_v0 = vperm.slane %v1102_v47, 0 }
 0x9fe   :  { %v526_v2 = vpop.permute.xlu2 %525 }
 0x9ff   :  { %v528_v4 = vmul.f32 %v526_v2, %v520_v3  ;;  %v205_v2 = vrot.slane %v1080_v58, 1 }
 0xa01   :  { %530 = vrot.lane.b32.xlu0 %v528_v4, %s1029_s18  ;;  %v210_v4 = vrot.slane %v1080_v58, 6 }
 0xa73   :  { %v531_v6 = vpop.permute.xlu0 %530 }
 0xa74   :  { %v533_v7 = vadd.f32 %v531_v6, %v523_v5  ;;  %v218_v5 = vperm.slane %v210_v4, 0  ;;  %v434_v4 = vrot.slane %v1102_v47, 6 }
 0xa76   :  { %1002 = vtanh.f32 %v533_v7 }
 0xa7c   :  { %v1003_v8 = vpop.eup %1002 }
 0xa7d   :  { %536 = vrot.lane.b32.xlu1 %v1003_v8, %s1029_s18 }
 0xaef   :  { %v537_v9 = vpop.permute.xlu1 %536 }
 0xaf0   :  { %v1113_v10 = vmul.f32 %v537_v9, %v520_v3  ;;  %v213_v3 = vperm.slane %v205_v2, 0 }
 0xaf2   :  { %590 = vrot.lane.b32.xlu2 %v1113_v10, %s1030_s19 }
 0xb4c   :  { %v591_v11 = vpop.permute.xlu2 %590 }
 0xb4d   :  { %952 = vmatmul.msk.f32.vlgmr.msrb.gmra.mxu1 %vm15_vm0, %v591_v11 }
 0xbca   :  { %v611_v13 = vpop.f32.mrf.mxu1 }
 0xbcb   :  { %v614_v14 = vadd.f32 %v951_v12, %v611_v13  ;;  %v92_v12 = vrot.slane %v1069_v32, 1 }
 0xbcd   :  { %1004 = vtanh.f32 %v614_v14  ;;  %v953_v16 = vmul.f32 -1.442695, %v614_v14  ;;  %v100_v14 = vperm.slane %v92_v12, 0 }
 0xbcf   :  { %1006 = vpow2.f32 %v953_v16 }
 0xbd3   :  { %v1005_v15 = vpop.eup %1004 }
 0xbd4   :  { %637 = vrot.lane.b32.xlu0 %v1005_v15, %s1029_s18  ;;  %v95_v15 = vrot.slane %v1069_v32, 4 }
 0xbd5   :  { %v1007_v17 = vpop.eup %1006 }
 0xbd6   :  { %v618_v18 = vadd.f32 1.0, %v1007_v17  ;;  %v103_v17 = vperm.slane %v95_v15, 0 }
 0xbd8   :  { %1008 = vrcp.f32 %v618_v18  ;;  %v630_v25 = vand.u32 2147483648, %v618_v18  ;;  %vm624_vm7 = vweird.f32 %v618_v18  ;;  %v628_v26 = vand.u32 2147483647, %v618_v18 }
 0xbda   :  { %v631_v28 = vor.u32 1.1754944e-38, %v630_v25  ;;  %vm629_vm9 = vcmp.eq.f32.partialorder %v628_v26, 8.507059e+37  ;;  %v208_v25 = vrot.slane %v1080_v58, 4 }
 0xbdc   :  { %v216_v26 = vperm.slane %v208_v25, 0 }
 0xbde   :  { %v1009_v19 = vpop.eup %1008 }
 0xbdf   :  { %v620_v21 = vmul.f32 %v1009_v19, %v618_v18  ;;  %vm625_vm6 = vweird.f32 %v1009_v19  ;;  %v98_v18 = vrot.slane %v1069_v32, 7 }
 0xbe0   :  { %vm626_vm8 = vmor %vm624_vm7, %vm625_vm6 }
 0xbe1   :  { %v621_v22 = vsub.f32 1.0, %v620_v21  ;;  %v106_v21 = vperm.slane %v98_v18, 0 }
 0xbe3   :  { %v622_v23 = vmul.f32 %v1009_v19, %v621_v22  ;;  %v206_v22 = vrot.slane %v1080_v58, 2 }
 0xbe5   :  { %v623_v24 = vadd.f32 %v1009_v19, %v622_v23 }
 0xbe7   :  { %v627_v27 = vsel %vm626_vm8, %v1009_v19, %v623_v24  ;;  %v214_v24 = vperm.slane %v206_v22, 0 }
 0xbe8   :  { %v632_v30 = vsel %vm629_vm9, %v631_v28, %v627_v27  ;;  %v211_v27 = vrot.slane %v1080_v58, 7 }
 0xbe9   :  { %v635_v33 = vmul.f32 %v632_v30, %v533_v7 }
 0xbea   :  { %v219_v28 = vperm.slane %v211_v27, 0 }
 0xc46   :  { %v638_v29 = vpop.permute.xlu0 %637 }
 0xc47   :  { %v640_v31 = vmul.f32 %v638_v29, %v632_v30  ;;  %v318_v29 = vrot.slane %v1091_v20, 2 }
 0xc49   :  { %642 = vrot.lane.b32.xlu1 %v640_v31, %s1029_s18  ;;  %v321_v31 = vrot.slane %v1091_v20, 5 }
 0xcbb   :  { %v643_v34 = vpop.permute.xlu1 %642 }
 0xcbc   :  { %v645_v35 = vadd.f32 %v643_v34, %v635_v33  ;;  %v329_v33 = vperm.slane %v321_v31, 0  ;;  %v430_v34 = vrot.slane %v1102_v47, 2 }
 0xcbe   :  { %1010 = vtanh.f32 %v645_v35 }
 0xcc4   :  { %v1011_v36 = vpop.eup %1010 }
 0xcc5   :  { %648 = vrot.lane.b32.xlu2 %v1011_v36, %s1029_s18  ;;  %v433_v36 = vrot.slane %v1102_v47, 5 }
 0xd1f   :  { %v649_v37 = vpop.permute.xlu2 %648 }
 0xd20   :  { %v1124_v38 = vmul.f32 %v649_v37, %v632_v30  ;;  %v326_v30 = vperm.slane %v318_v29, 0  ;;  %v441_v37 = vperm.slane %v433_v36, 0 }
 0xd22   :  { %702 = vrot.lane.b32.xlu0 %v1124_v38, %s1030_s19  ;;  %v653_v12 = vrot.slane %v1124_v38, 1  ;;  %v656_v15 = vrot.slane %v1124_v38, 4  ;;  %v659_v18 = vrot.slane %v1124_v38, 7 }
 0xd94   :  { %v703_v39 = vpop.permute.xlu0 %702 }
 0xd95   :  { %955 = vmatmul.msk.f32.vlgmr.msrb.gmra.mxu2 %vm15_vm0, %v703_v39 }
 0xe18   :  { %v723_v41 = vpop.f32.mrf.mxu2 }
 0xe19   :  { %v726_v42 = vadd.f32 %v954_v40, %v723_v41  ;;  %v93_v41 = vrot.slane %v1069_v32, 2 }
 0xe1b   :  { %1012 = vtanh.f32 %v726_v42  ;;  %v956_v44 = vmul.f32 -1.442695, %v726_v42 }
 0xe1d   :  { %1014 = vpow2.f32 %v956_v44  ;;  %v96_v44 = vrot.slane %v1069_v32, 5  ;;  %v207_v32 = vrot.slane %v1080_v58, 3 }
 0xe21   :  { %v1013_v43 = vpop.eup %1012 }
 0xe22   :  { %749 = vrot.lane.b32.xlu1 %v1013_v43, %s1029_s18  ;;  %v101_v43 = vperm.slane %v93_v41, 0 }
 0xe23   :  { %v1015_v45 = vpop.eup %1014 }
 0xe24   :  { %v730_v46 = vadd.f32 1.0, %v1015_v45 }
 0xe26   :  { %1016 = vrcp.f32 %v730_v46  ;;  %v742_v53 = vand.u32 2147483648, %v730_v46  ;;  %vm736_vm11 = vweird.f32 %v730_v46  ;;  %v740_v54 = vand.u32 2147483647, %v730_v46 }
 0xe28   :  { %v743_v56 = vor.u32 1.1754944e-38, %v742_v53  ;;  %vm741_vm13 = vcmp.eq.f32.partialorder %v740_v54, 8.507059e+37 }
 0xe2c   :  { %v1017_v48 = vpop.eup %1016 }
 0xe2d   :  { %v732_v49 = vmul.f32 %v1017_v48, %v730_v46  ;;  %vm737_vm10 = vweird.f32 %v1017_v48  ;;  %v104_v46 = vperm.slane %v96_v44, 0 }
 0xe2e   :  { %vm738_vm12 = vmor %vm736_vm11, %vm737_vm10 }
 0xe2f   :  { %v733_v50 = vsub.f32 1.0, %v732_v49  ;;  %v212_v49 = vperm.slane %v1080_v58, 0 }
 0xe31   :  { %v734_v51 = vmul.f32 %v1017_v48, %v733_v50 }
 0xe33   :  { %v735_v52 = vadd.f32 %v1017_v48, %v734_v51  ;;  %v215_v51 = vperm.slane %v207_v32, 0  ;;  %v429_v32 = vrot.slane %v1102_v47, 1 }
 0xe35   :  { %v739_v55 = vsel %vm738_vm12, %v1017_v48, %v735_v52  ;;  %v209_v52 = vrot.slane %v1080_v58, 5  ;;  %v319_v58 = vrot.slane %v1091_v20, 3 }
 0xe36   :  { %v1133_v59 = vsel %vm741_vm13, %v743_v56, %v739_v55  ;;  %v324_v56 = vperm.slane %v1091_v20, 0 }
 0xe37   :  { %v747_v6 = vmul.f32 %v1133_v59, %v645_v35  ;;  %v438_v35 = vperm.slane %v430_v34, 0  ;;  %v217_v54 = vperm.slane %v209_v52, 0 }
 0xe94   :  { %v750_v57 = vpop.permute.xlu1 %749 }
 0xe95   :  { %v752_v60 = vmul.f32 %v750_v57, %v1133_v59 }
 0xe97   :  { %754 = vrot.lane.b32.xlu2 %v752_v60, %s1029_s18  ;;  %v322_v60 = vrot.slane %v1091_v20, 6 }
 0xe99   :  { %v330_v62 = vperm.slane %v322_v60, 0 }
 0xe9f   :  { %107 = vrot.lane.b32.xlu2 %v99_v61, %s1030_s19 }
 0xea7   :  { %113 = vrot.lane.b32.xlu2 %v102_v63, %s1030_s19 }
 0xeaf   :  { %119 = vrot.lane.b32.xlu2 %v105_v1, %s1030_s19  ;;  %v431_v1 = vrot.slane %v1102_v47, 3 }
 0xeb7   :  { %222 = vrot.lane.b32.xlu2 %v213_v3, %s1030_s19  ;;  %v439_v3 = vperm.slane %v431_v1, 0 }
 0xebf   :  { %232 = vrot.lane.b32.xlu2 %v218_v5, %s1030_s19  ;;  %v442_v5 = vperm.slane %v434_v4, 0  ;;  %v657_v4 = vrot.slane %v1124_v38, 5 }
 0xef1   :  { %v755_v7 = vpop.permute.xlu2 %754 }
 0xef2   :  { %v1148_v8 = vadd.f32 %v755_v7, %v747_v6  ;;  %v541_v6 = vrot.slane %v1113_v10, 1 }
 0xef4   :  { %1018 = vtanh.f32 %v1148_v8  ;;  %v549_v7 = vperm.slane %v541_v6, 0 }
 0xef9   :  { %v108_v9 = vpop.permute.xlu2 %107 }
 0xefa   :  { %v1019_v11 = vpop.eup %1018  ;;  %132 = vst.msk [vmem:[%s1541_s2] sm:$0x1] %vm131_vm14, %v108_v9  ;;  %v544_v9 = vrot.slane %v1113_v10, 4 }
 0xefb   :  { %760 = vrot.lane.b32.xlu0 %v1019_v11, %s1029_s18 }
 0xefc   :  { %v552_v11 = vperm.slane %v544_v9, 0  ;;  %v665_v9 = vperm.slane %v657_v4, 0 }
 0xf01   :  { %v114_v13 = vpop.permute.xlu2 %113 }
 0xf02   :  { %135 = vst.msk [vmem:[%s1541_s2 + $0x18] sm:$0x1] %vm131_vm14, %v114_v13  ;;  %v661_v13 = vperm.slane %v653_v12, 0 }
 0xf03   :  { %109 = vrot.lane.b32.xlu0 %v100_v14, %s1030_s19 }
 0xf09   :  { %v120_v16 = vpop.permute.xlu2 %119 }
 0xf0a   :  { %138 = vst.msk [vmem:[%s1541_s2 + $0x30] sm:$0x1] %vm131_vm14, %v120_v16  ;;  %v664_v16 = vperm.slane %v656_v15, 0 }
 0xf0b   :  { %115 = vrot.lane.b32.xlu0 %v103_v17, %s1030_s19 }
 0xf11   :  { %v223_v19 = vpop.permute.xlu2 %222 }
 0xf12   :  { %245 = vst.msk [vmem:[%s1541_s2 + $0x9] sm:$0x1] %vm131_vm14, %v223_v19  ;;  %v667_v19 = vperm.slane %v659_v18, 0 }
 0xf13   :  { %121 = vrot.lane.b32.xlu0 %v106_v21, %s1030_s19 }
 0xf19   :  { %v233_v23 = vpop.permute.xlu2 %232 }
 0xf1a   :  { %250 = vst.msk [vmem:[%s1541_s2 + $0x31] sm:$0x1] %vm131_vm14, %v233_v23 }
 0xf1b   :  { %224 = vrot.lane.b32.xlu0 %v214_v24, %s1030_s19 }
 0xf23   :  { %228 = vrot.lane.b32.xlu0 %v216_v26, %s1030_s19 }
 0xf2b   :  { %234 = vrot.lane.b32.xlu0 %v219_v28, %s1030_s19 }
 0xf33   :  { %336 = vrot.lane.b32.xlu0 %v326_v30, %s1030_s19 }
 0xf3b   :  { %342 = vrot.lane.b32.xlu0 %v329_v33, %s1030_s19 }
 0xf43   :  { %448 = vrot.lane.b32.xlu0 %v438_v35, %s1030_s19 }
 0xf4b   :  { %454 = vrot.lane.b32.xlu0 %v441_v37, %s1030_s19  ;;  %v957_v37 = vld [vmem:[%s1540_s0 + $0x38] sm:$0xff] }
 0xf6d   :  { %v761_v39 = vpop.permute.xlu0 %760 }
 0xf6e   :  { %v1193_v40 = vmul.f32 %v761_v39, %v1133_v59  ;;  %v327_v59 = vperm.slane %v319_v58, 0 }
 0xf70   :  { %814 = vrot.lane.b32.xlu1 %v1193_v40, %s1030_s19  ;;  %v767_v18 = vrot.slane %v1193_v40, 3 }
 0xf75   :  { %v110_v42 = vpop.permute.xlu0 %109 }
 0xf76   :  { %133 = vst.msk [vmem:[%s1541_s2 + $0x8] sm:$0x1] %vm131_vm14, %v110_v42 }
 0xf78   :  { %111 = vrot.lane.b32.xlu1 %v101_v43, %s1030_s19  ;;  %v317_v43 = vrot.slane %v1091_v20, 1 }
 0xf7a   :  { %v325_v44 = vperm.slane %v317_v43, 0 }
 0xf7d   :  { %v116_v45 = vpop.permute.xlu0 %115 }
 0xf7e   :  { %136 = vst.msk [vmem:[%s1541_s2 + $0x20] sm:$0x1] %vm131_vm14, %v116_v45  ;;  %v320_v45 = vrot.slane %v1091_v20, 4 }
 0xf80   :  { %117 = vrot.lane.b32.xlu1 %v104_v46, %s1030_s19  ;;  %v328_v46 = vperm.slane %v320_v45, 0  ;;  %v771_v45 = vrot.slane %v1193_v40, 7 }
 0xf85   :  { %v122_v48 = vpop.permute.xlu0 %121 }
 0xf86   :  { %139 = vst.msk [vmem:[%s1541_s2 + $0x38] sm:$0x1] %vm131_vm14, %v122_v48  ;;  %v323_v48 = vrot.slane %v1091_v20, 7  ;;  %v542_v20 = vrot.slane %v1113_v10, 2 }
 0xf88   :  { %220 = vrot.lane.b32.xlu1 %v212_v49, %s1030_s19  ;;  %v331_v49 = vperm.slane %v323_v48, 0  ;;  %v779_v48 = vperm.slane %v771_v45, 0 }
 0xf8d   :  { %v225_v50 = vpop.permute.xlu0 %224 }
 0xf8e   :  { %246 = vst.msk [vmem:[%s1541_s2 + $0x11] sm:$0x1] %vm131_vm14, %v225_v50  ;;  %v437_v50 = vperm.slane %v429_v32, 0 }
 0xf90   :  { %226 = vrot.lane.b32.xlu1 %v215_v51, %s1030_s19  ;;  %v432_v51 = vrot.slane %v1102_v47, 4 }
 0xf92   :  { %v440_v52 = vperm.slane %v432_v51, 0 }
 0xf95   :  { %v229_v53 = vpop.permute.xlu0 %228 }
 0xf96   :  { %248 = vst.msk [vmem:[%s1541_s2 + $0x21] sm:$0x1] %vm131_vm14, %v229_v53  ;;  %v435_v53 = vrot.slane %v1102_v47, 7  ;;  %v547_v47 = vrot.slane %v1113_v10, 7 }
 0xf98   :  { %230 = vrot.lane.b32.xlu1 %v217_v54, %s1030_s19 }
 0xf9d   :  { %v235_v55 = vpop.permute.xlu0 %234 }
 0xf9e   :  { %251 = vst.msk [vmem:[%s1541_s2 + $0x39] sm:$0x1] %vm131_vm14, %v235_v55  ;;  %v443_v55 = vperm.slane %v435_v53, 0 }
 0xfa0   :  { %332 = vrot.lane.b32.xlu1 %v324_v56, %s1030_s19  ;;  %v550_v56 = vperm.slane %v542_v20, 0 }
 0xfa5   :  { %v337_v57 = vpop.permute.xlu0 %336 }
 0xfa6   :  { %358 = vst.msk [vmem:[%s1541_s2 + $0x12] sm:$0x1] %vm131_vm14, %v337_v57 }
 0xfa8   :  { %338 = vrot.lane.b32.xlu1 %v327_v59, %s1030_s19  ;;  %v545_v59 = vrot.slane %v1113_v10, 5 }
 0xfaa   :  { %v553_v60 = vperm.slane %v545_v59, 0 }
 0xfad   :  { %v343_v61 = vpop.permute.xlu0 %342 }
 0xfae   :  { %361 = vst.msk [vmem:[%s1541_s2 + $0x2a] sm:$0x1] %vm131_vm14, %v343_v61 }
 0xfb0   :  { %344 = vrot.lane.b32.xlu1 %v330_v62, %s1030_s19  ;;  %v555_v62 = vperm.slane %v547_v47, 0 }
 0xfb5   :  { %v449_v63 = vpop.permute.xlu0 %448 }
 0xfb6   :  { %470 = vst.msk [vmem:[%s1541_s2 + $0x13] sm:$0x1] %vm131_vm14, %v449_v63 }
 0xfb8   :  { %444 = vrot.lane.b32.xlu1 %v436_v0, %s1030_s19  ;;  %v654_v0 = vrot.slane %v1124_v38, 2 }
 0xfbd   :  { %v455_v2 = vpop.permute.xlu0 %454 }
 0xfbe   :  { %473 = vst.msk [vmem:[%s1541_s2 + $0x2b] sm:$0x1] %vm131_vm14, %v455_v2  ;;  %v662_v2 = vperm.slane %v654_v0, 0 }
 0xfc0   :  { %450 = vrot.lane.b32.xlu1 %v439_v3, %s1030_s19 }
 0xfc8   :  { %456 = vrot.lane.b32.xlu1 %v442_v5, %s1030_s19 }
 0xfd0   :  { %558 = vrot.lane.b32.xlu1 %v549_v7, %s1030_s19 }
 0xfd8   :  { %564 = vrot.lane.b32.xlu1 %v552_v11, %s1030_s19 }
 0xfe0   :  { %670 = vrot.lane.b32.xlu1 %v661_v13, %s1030_s19 }
 0xfe2   :  { %v815_v14 = vpop.permute.xlu1 %814 }
 0xfe3   :  { %958 = vmatmul.msk.f32.vlgmr.msrb.gmra.mxu3 %vm15_vm0, %v815_v14 }
 0xfe8   :  { %676 = vrot.lane.b32.xlu1 %v664_v16, %s1030_s19  ;;  %v772_v16 = vperm.slane %v1193_v40, 0 }
 0xfea   :  { %v112_v17 = vpop.permute.xlu1 %111 }
 0xfeb   :  { %134 = vst.msk [vmem:[%s1541_s2 + $0x10] sm:$0x1] %vm131_vm14, %v112_v17 }
 0xff0   :  { %682 = vrot.lane.b32.xlu1 %v667_v19, %s1030_s19  ;;  %v548_v19 = vperm.slane %v1113_v10, 0 }
 0xff2   :  { %v118_v21 = vpop.permute.xlu1 %117 }
 0xff3   :  { %137 = vst.msk [vmem:[%s1541_s2 + $0x28] sm:$0x1] %vm131_vm14, %v118_v21  ;;  %v775_v21 = vperm.slane %v767_v18, 0 }
 0xffa   :  { %v221_v22 = vpop.permute.xlu1 %220 }
 0xffb   :  { %244 = vst.msk [vmem:[%s1541_s2 + $0x1] sm:$0x1] %vm131_vm14, %v221_v22  ;;  %v543_v22 = vrot.slane %v1113_v10, 3 }
0x1002   :  { %v227_v23 = vpop.permute.xlu1 %226 }
0x1003   :  { %247 = vst.msk [vmem:[%s1541_s2 + $0x19] sm:$0x1] %vm131_vm14, %v227_v23 }
0x100a   :  { %v231_v24 = vpop.permute.xlu1 %230 }
0x100b   :  { %249 = vst.msk [vmem:[%s1541_s2 + $0x29] sm:$0x1] %vm131_vm14, %v231_v24  ;;  %v770_v24 = vrot.slane %v1193_v40, 6 }
0x1012   :  { %v333_v25 = vpop.permute.xlu1 %332 }
0x1013   :  { %356 = vst.msk [vmem:[%s1541_s2 + $0x2] sm:$0x1] %vm131_vm14, %v333_v25  ;;  %v551_v25 = vperm.slane %v543_v22, 0 }
0x101a   :  { %v339_v26 = vpop.permute.xlu1 %338 }
0x101b   :  { %359 = vst.msk [vmem:[%s1541_s2 + $0x1a] sm:$0x1] %vm131_vm14, %v339_v26  ;;  %v778_v26 = vperm.slane %v770_v24, 0 }
0x1022   :  { %v345_v27 = vpop.permute.xlu1 %344 }
0x1023   :  { %362 = vst.msk [vmem:[%s1541_s2 + $0x32] sm:$0x1] %vm131_vm14, %v345_v27  ;;  %v546_v27 = vrot.slane %v1113_v10, 6  ;;  %v655_v10 = vrot.slane %v1124_v38, 3 }
0x102a   :  { %v445_v28 = vpop.permute.xlu1 %444 }
0x102b   :  { %468 = vst.msk [vmem:[%s1541_s2 + $0x3] sm:$0x1] %vm131_vm14, %v445_v28 }
0x1032   :  { %v451_v29 = vpop.permute.xlu1 %450 }
0x1033   :  { %471 = vst.msk [vmem:[%s1541_s2 + $0x1b] sm:$0x1] %vm131_vm14, %v451_v29  ;;  %v554_v29 = vperm.slane %v546_v27, 0 }
0x103a   :  { %v457_v30 = vpop.permute.xlu1 %456 }
0x103b   :  { %474 = vst.msk [vmem:[%s1541_s2 + $0x33] sm:$0x1] %vm131_vm14, %v457_v30 }
0x1042   :  { %v559_v31 = vpop.permute.xlu1 %558 }
0x1043   :  { %581 = vst.msk [vmem:[%s1541_s2 + $0xc] sm:$0x1] %vm131_vm14, %v559_v31  ;;  %v660_v31 = vperm.slane %v1124_v38, 0 }
0x104a   :  { %v565_v33 = vpop.permute.xlu1 %564 }
0x104b   :  { %584 = vst.msk [vmem:[%s1541_s2 + $0x24] sm:$0x1] %vm131_vm14, %v565_v33 }
0x1052   :  { %v671_v34 = vpop.permute.xlu1 %670 }
0x1053   :  { %693 = vst.msk [vmem:[%s1541_s2 + $0xd] sm:$0x1] %vm131_vm14, %v671_v34  ;;  %v663_v34 = vperm.slane %v655_v10, 0 }
0x105a   :  { %v677_v35 = vpop.permute.xlu1 %676 }
0x105b   :  { %696 = vst.msk [vmem:[%s1541_s2 + $0x25] sm:$0x1] %vm131_vm14, %v677_v35  ;;  %v658_v35 = vrot.slane %v1124_v38, 6  ;;  %v768_v38 = vrot.slane %v1193_v40, 4 }
0x1062   :  { %v683_v36 = vpop.permute.xlu1 %682 }
0x1063   :  { %699 = vst.msk [vmem:[%s1541_s2 + $0x3d] sm:$0x1] %vm131_vm14, %v683_v36 }
0x1066   :  { %v835_v39 = vpop.f32.mrf.mxu3 }
0x1067   :  { %v838_v41 = vadd.f32 %v957_v37, %v835_v39  ;;  %v666_v37 = vperm.slane %v658_v35, 0  ;;  %v765_v39 = vrot.slane %v1193_v40, 1 }
0x1069   :  { %1020 = vtanh.f32 %v838_v41  ;;  %v959_v54 = vmul.f32 -1.442695, %v838_v41 }
0x106b   :  { %1022 = vpow2.f32 %v959_v54 }
0x106f   :  { %v1021_v42 = vpop.eup %1020 }
0x1070   :  { %861 = vrot.lane.b32.xlu2 %v1021_v42, %s1029_s18  ;;  %v773_v42 = vperm.slane %v765_v39, 0 }
0x1071   :  { %v1023_v58 = vpop.eup %1022 }
0x1072   :  { %v842_v57 = vadd.f32 1.0, %v1023_v58  ;;  %v766_v58 = vrot.slane %v1193_v40, 2 }
0x1074   :  { %1024 = vrcp.f32 %v842_v57  ;;  %v854_v6 = vand.u32 2147483648, %v842_v57  ;;  %vm848_vm1 = vweird.f32 %v842_v57  ;;  %v852_v7 = vand.u32 2147483647, %v842_v57 }
0x1075   :  { %v774_v59 = vperm.slane %v766_v58, 0 }
0x1076   :  { %v855_v12 = vor.u32 1.1754944e-38, %v854_v6  ;;  %vm853_vm3 = vcmp.eq.f32.partialorder %v852_v7, 8.507059e+37 }
0x1078   :  { %334 = vrot.lane.b32.xlu2 %v325_v44, %s1030_s19  ;;  %v776_v44 = vperm.slane %v768_v38, 0 }
0x107a   :  { %v1025_v61 = vpop.eup %1024 }
0x107b   :  { %v844_v63 = vmul.f32 %v1025_v61, %v842_v57  ;;  %vm849_vm15 = vweird.f32 %v1025_v61 }
0x107c   :  { %vm850_vm2 = vmor %vm848_vm1, %vm849_vm15 }
0x107d   :  { %v845_v1 = vsub.f32 1.0, %v844_v63 }
0x107f   :  { %v846_v3 = vmul.f32 %v1025_v61, %v845_v1 }
0x1080   :  { %340 = vrot.lane.b32.xlu2 %v328_v46, %s1030_s19 }
0x1081   :  { %v847_v5 = vadd.f32 %v1025_v61, %v846_v3 }
0x1083   :  { %v851_v11 = vsel %vm850_vm2, %v1025_v61, %v847_v5 }
0x1084   :  { %v1360_v13 = vsel %vm853_vm3, %v855_v12, %v851_v11 }
0x1085   :  { %v859_v53 = vmul.f32 %v1360_v13, %v1148_v8  ;;  %v769_v8 = vrot.slane %v1193_v40, 5 }
0x1087   :  { %v777_v47 = vperm.slane %v769_v8, 0 }
0x1088   :  { %346 = vrot.lane.b32.xlu2 %v331_v49, %s1030_s19 }
0x1090   :  { %446 = vrot.lane.b32.xlu2 %v437_v50, %s1030_s19 }
0x1098   :  { %452 = vrot.lane.b32.xlu2 %v440_v52, %s1030_s19 }
0x10a0   :  { %458 = vrot.lane.b32.xlu2 %v443_v55, %s1030_s19 }
0x10a8   :  { %560 = vrot.lane.b32.xlu2 %v550_v56, %s1030_s19 }
0x10b0   :  { %566 = vrot.lane.b32.xlu2 %v553_v60, %s1030_s19 }
0x10b8   :  { %570 = vrot.lane.b32.xlu2 %v555_v62, %s1030_s19 }
0x10c0   :  { %672 = vrot.lane.b32.xlu2 %v662_v2, %s1030_s19 }
0x10c8   :  { %678 = vrot.lane.b32.xlu2 %v665_v9, %s1030_s19 }
0x10ca   :  { %v862_v14 = vpop.permute.xlu2 %861 }
0x10cb   :  { %v864_v15 = vmul.f32 %v862_v14, %v1360_v13 }
0x10cd   :  { %866 = vrot.lane.b32.xlu0 %v864_v15, %s1029_s18 }
0x10d0   :  { %780 = vrot.lane.b32.xlu2 %v772_v16, %s1030_s19 }
0x10d2   :  { %v335_v17 = vpop.permute.xlu2 %334 }
0x10d3   :  { %357 = vst.msk [vmem:[%s1541_s2 + $0xa] sm:$0x1] %vm131_vm14, %v335_v17 }
0x10d5   :  { %556 = vrot.lane.b32.xlu0 %v548_v19, %s1030_s19 }
0x10d8   :  { %786 = vrot.lane.b32.xlu2 %v775_v21, %s1030_s19 }
0x10da   :  { %v341_v23 = vpop.permute.xlu2 %340 }
0x10db   :  { %360 = vst.msk [vmem:[%s1541_s2 + $0x22] sm:$0x1] %vm131_vm14, %v341_v23 }
0x10dd   :  { %562 = vrot.lane.b32.xlu0 %v551_v25, %s1030_s19 }
0x10e0   :  { %792 = vrot.lane.b32.xlu2 %v778_v26, %s1030_s19 }
0x10e2   :  { %v347_v28 = vpop.permute.xlu2 %346 }
0x10e3   :  { %363 = vst.msk [vmem:[%s1541_s2 + $0x3a] sm:$0x1] %vm131_vm14, %v347_v28 }
0x10e5   :  { %568 = vrot.lane.b32.xlu0 %v554_v29, %s1030_s19 }
0x10ea   :  { %v447_v30 = vpop.permute.xlu2 %446 }
0x10eb   :  { %469 = vst.msk [vmem:[%s1541_s2 + $0xb] sm:$0x1] %vm131_vm14, %v447_v30 }
0x10ed   :  { %668 = vrot.lane.b32.xlu0 %v660_v31, %s1030_s19 }
0x10f2   :  { %v453_v33 = vpop.permute.xlu2 %452 }
0x10f3   :  { %472 = vst.msk [vmem:[%s1541_s2 + $0x23] sm:$0x1] %vm131_vm14, %v453_v33 }
0x10f5   :  { %674 = vrot.lane.b32.xlu0 %v663_v34, %s1030_s19 }
0x10fa   :  { %v459_v36 = vpop.permute.xlu2 %458 }
0x10fb   :  { %475 = vst.msk [vmem:[%s1541_s2 + $0x3b] sm:$0x1] %vm131_vm14, %v459_v36 }
0x10fd   :  { %680 = vrot.lane.b32.xlu0 %v666_v37, %s1030_s19 }
0x1102   :  { %v561_v41 = vpop.permute.xlu2 %560 }
0x1103   :  { %582 = vst.msk [vmem:[%s1541_s2 + $0x14] sm:$0x1] %vm131_vm14, %v561_v41 }
0x1105   :  { %782 = vrot.lane.b32.xlu0 %v773_v42, %s1030_s19 }
0x110a   :  { %v567_v43 = vpop.permute.xlu2 %566 }
0x110b   :  { %585 = vst.msk [vmem:[%s1541_s2 + $0x2c] sm:$0x1] %vm131_vm14, %v567_v43 }
0x110d   :  { %788 = vrot.lane.b32.xlu0 %v776_v44, %s1030_s19 }
0x1112   :  { %v571_v46 = vpop.permute.xlu2 %570 }
0x1113   :  { %587 = vst.msk [vmem:[%s1541_s2 + $0x3c] sm:$0x1] %vm131_vm14, %v571_v46 }
0x1115   :  { %794 = vrot.lane.b32.xlu0 %v779_v48, %s1030_s19 }
0x111a   :  { %v673_v49 = vpop.permute.xlu2 %672 }
0x111b   :  { %694 = vst.msk [vmem:[%s1541_s2 + $0x15] sm:$0x1] %vm131_vm14, %v673_v49 }
0x1122   :  { %v679_v32 = vpop.permute.xlu2 %678 }
0x1123   :  { %697 = vst.msk [vmem:[%s1541_s2 + $0x2d] sm:$0x1] %vm131_vm14, %v679_v32 }
0x112a   :  { %v781_v50 = vpop.permute.xlu2 %780 }
0x112b   :  { %804 = vst.msk [vmem:[%s1541_s2 + $0x6] sm:$0x1] %vm131_vm14, %v781_v50 }
0x1132   :  { %v787_v51 = vpop.permute.xlu2 %786 }
0x1133   :  { %807 = vst.msk [vmem:[%s1541_s2 + $0x1e] sm:$0x1] %vm131_vm14, %v787_v51 }
0x113a   :  { %v793_v52 = vpop.permute.xlu2 %792 }
0x113b   :  { %810 = vst.msk [vmem:[%s1541_s2 + $0x36] sm:$0x1] %vm131_vm14, %v793_v52 }
0x113f   :  { %v867_v54 = vpop.permute.xlu0 %866 }
0x1140   :  { %v869_v55 = vadd.f32 %v867_v54, %v859_v53 }
0x1142   :  { %1026 = vtanh.f32 %v869_v55 }
0x1147   :  { %v557_v20 = vpop.permute.xlu0 %556 }
0x1148   :  { %v1027_v56 = vpop.eup %1026  ;;  %580 = vst.msk [vmem:[%s1541_s2 + $0x4] sm:$0x1] %vm131_vm14, %v557_v20 }
0x1149   :  { %872 = vrot.lane.b32.xlu1 %v1027_v56, %s1029_s18 }
0x114f   :  { %v563_v57 = vpop.permute.xlu0 %562 }
0x1150   :  { %583 = vst.msk [vmem:[%s1541_s2 + $0x1c] sm:$0x1] %vm131_vm14, %v563_v57 }
0x1151   :  { %784 = vrot.lane.b32.xlu1 %v774_v59, %s1030_s19 }
0x1157   :  { %v569_v60 = vpop.permute.xlu0 %568 }
0x1158   :  { %586 = vst.msk [vmem:[%s1541_s2 + $0x34] sm:$0x1] %vm131_vm14, %v569_v60 }
0x1159   :  { %790 = vrot.lane.b32.xlu1 %v777_v47, %s1030_s19 }
0x115f   :  { %v669_v61 = vpop.permute.xlu0 %668 }
0x1160   :  { %692 = vst.msk [vmem:[%s1541_s2 + $0x5] sm:$0x1] %vm131_vm14, %v669_v61 }
0x1167   :  { %v675_v62 = vpop.permute.xlu0 %674 }
0x1168   :  { %695 = vst.msk [vmem:[%s1541_s2 + $0x1d] sm:$0x1] %vm131_vm14, %v675_v62 }
0x116f   :  { %v681_v40 = vpop.permute.xlu0 %680 }
0x1170   :  { %698 = vst.msk [vmem:[%s1541_s2 + $0x35] sm:$0x1] %vm131_vm14, %v681_v40 }
0x1177   :  { %v783_v63 = vpop.permute.xlu0 %782 }
0x1178   :  { %805 = vst.msk [vmem:[%s1541_s2 + $0xe] sm:$0x1] %vm131_vm14, %v783_v63 }
0x117f   :  { %v789_v0 = vpop.permute.xlu0 %788 }
0x1180   :  { %808 = vst.msk [vmem:[%s1541_s2 + $0x26] sm:$0x1] %vm131_vm14, %v789_v0 }
0x1187   :  { %v795_v1 = vpop.permute.xlu0 %794 }
0x1188   :  { %811 = vst.msk [vmem:[%s1541_s2 + $0x3e] sm:$0x1] %vm131_vm14, %v795_v1 }
0x11bb   :  { %v873_v2 = vpop.permute.xlu1 %872 }
0x11bc   :  { %v875_v3 = vmul.f32 %v873_v2, %v1360_v13 }
0x11be   :  { %v884_v4 = vperm.slane %v875_v3, 0  ;;  %v878_v5 = vrot.slane %v875_v3, 2  ;;  %v877_v6 = vrot.slane %v875_v3, 1  ;;  %v879_v11 = vrot.slane %v875_v3, 3 }
0x11bf   :  { %v881_v14 = vrot.slane %v875_v3, 5  ;;  %v880_v13 = vrot.slane %v875_v3, 4  ;;  %v882_v18 = vrot.slane %v875_v3, 6  ;;  %v883_v21 = vrot.slane %v875_v3, 7 }
0x11c0   :  { %892 = vrot.lane.b32.xlu1 %v884_v4, %s1030_s19  ;;  %v886_v7 = vperm.slane %v878_v5, 0  ;;  %v885_v9 = vperm.slane %v877_v6, 0  ;;  %v887_v15 = vperm.slane %v879_v11, 0 }
0x11c1   :  { %v889_v16 = vperm.slane %v881_v14, 0  ;;  %v888_v17 = vperm.slane %v880_v13, 0  ;;  %v890_v22 = vperm.slane %v882_v18, 0  ;;  %v891_v23 = vperm.slane %v883_v21, 0 }
0x11c2   :  { %896 = vrot.lane.b32.xlu0 %v886_v7, %s1030_s19  ;;  %894 = vrot.lane.b32.xlu2 %v885_v9, %s1030_s19 }
0x11c3   :  { %v785_v12 = vpop.permute.xlu1 %784 }
0x11c4   :  { %806 = vst.msk [vmem:[%s1541_s2 + $0x16] sm:$0x1] %vm131_vm14, %v785_v12 }
0x11c8   :  { %898 = vrot.lane.b32.xlu1 %v887_v15, %s1030_s19 }
0x11ca   :  { %902 = vrot.lane.b32.xlu0 %v889_v16, %s1030_s19  ;;  %900 = vrot.lane.b32.xlu2 %v888_v17, %s1030_s19 }
0x11cb   :  { %v791_v19 = vpop.permute.xlu1 %790 }
0x11cc   :  { %809 = vst.msk [vmem:[%s1541_s2 + $0x2e] sm:$0x1] %vm131_vm14, %v791_v19 }
0x11d0   :  { %904 = vrot.lane.b32.xlu1 %v890_v22, %s1030_s19 }
0x11d2   :  { %924 = vrot.lane.b32.xlu0 %v875_v3, %s1030_s19  ;;  %906 = vrot.lane.b32.xlu2 %v891_v23, %s1030_s19 }
0x11d8   :  { %929 = vrot.lane.b32.xlu1 %v869_v55, %s1031_s7 }
0x121c   :  { %v895_v24 = vpop.permute.xlu2 %894 }
0x121d   :  { %917 = vst.msk [vmem:[%s1541_s2 + $0xf] sm:$0x1] %vm131_vm14, %v895_v24 }
0x1224   :  { %v901_v25 = vpop.permute.xlu2 %900 }
0x1225   :  { %920 = vst.msk [vmem:[%s1541_s2 + $0x27] sm:$0x1] %vm131_vm14, %v901_v25 }
0x122c   :  { %v907_v26 = vpop.permute.xlu2 %906 }
0x122d   :  { %923 = vst.msk [vmem:[%s1541_s2 + $0x3f] sm:$0x1] %vm131_vm14, %v907_v26 }
0x1232   :  { %v893_v27 = vpop.permute.xlu1 %892 }
0x1233   :  { %916 = vst.msk [vmem:[%s1541_s2 + $0x7] sm:$0x1] %vm131_vm14, %v893_v27 }
0x1234   :  { %v897_v28 = vpop.permute.xlu0 %896 }
0x1235   :  { %918 = vst.msk [vmem:[%s1541_s2 + $0x17] sm:$0x1] %vm131_vm14, %v897_v28 }
0x123a   :  { %v899_v29 = vpop.permute.xlu1 %898 }
0x123b   :  { %919 = vst.msk [vmem:[%s1541_s2 + $0x1f] sm:$0x1] %vm131_vm14, %v899_v29 }
0x123c   :  { %v903_v30 = vpop.permute.xlu0 %902 }
0x123d   :  { %921 = vst.msk [vmem:[%s1541_s2 + $0x2f] sm:$0x1] %vm131_vm14, %v903_v30 }
0x1242   :  { %v905_v31 = vpop.permute.xlu1 %904 }
0x1243   :  { %922 = vst.msk [vmem:[%s1541_s2 + $0x37] sm:$0x1] %vm131_vm14, %v905_v31 }
0x1244   :  { %v925_v10 = vpop.permute.xlu0 %924 }
0x1245   :  { %927 = vst.msk [vmem:[#allocation2] sm:$0xff] %vm15_vm0, %v925_v10 }
0x124a   :  { %v930_v33 = vpop.permute.xlu1 %929 }
0x124b   :  { %932 = vst.msk [vmem:[#allocation3] sm:$0xff] %vm15_vm0, %v930_v33 }

</bundles_post_ra>
